<compile_context>
chip_gen: v7x
topology: tpu7x:2x2x1
jax: 0.10.0
libtpu: 0.0.40
codegen_flags: <defaults>
</compile_context>

<pallas_src>
import functools
import math

import numpy as np
import jax
import jax.numpy as jnp
from jax.experimental import pallas as pl
from jax.experimental.pallas import tpu as pltpu

DIM = 64        # embedding width (full last dim, lane resident)
N_TILE = 128    # entity / user row tile
E_TILE = 512    # edge tile (grid reduction axis)

_VMEM = functools.partial(pl.BlockSpec, memory_space=pltpu.MemorySpace.VMEM)


def _round_up(x, m):
    return ((x + m - 1) // m) * m


# --------------------------------------------------------------------------- #
# Kernel 1: tiled segment-MEAN (mask branch): out[n] = mean_{tail==n} src*wt   #
# --------------------------------------------------------------------------- #
def _seg_mean_kernel(seg_ref, src_ref, wt_ref, out_ref, acc_ref, cnt_ref):
    e = pl.program_id(1)

    @pl.when(e == 0)
    def _():
        acc_ref[...] = jnp.zeros_like(acc_ref)
        cnt_ref[...] = jnp.zeros_like(cnt_ref)

    rows = (pl.program_id(0) * N_TILE
            + jax.lax.broadcasted_iota(jnp.int32, (N_TILE, E_TILE), 0))
    hit = rows == seg_ref[...]                          # (N_TILE, E_TILE), pad seg = -1
    msg = src_ref[...] * wt_ref[...]                    # bf16 (E_TILE, DIM), fused message
    acc_ref[...] += jnp.dot(hit.astype(jnp.bfloat16), msg,
                            preferred_element_type=jnp.float32)
    cnt_ref[...] += jnp.sum(hit.astype(jnp.float32), axis=1, keepdims=True)

    @pl.when(e == pl.num_programs(1) - 1)
    def _():
        out_ref[...] = acc_ref[...] / jnp.maximum(cnt_ref[...], 1.0)


def pallas_segment_mean(seg, src_bf16, wt_bf16, n_rows_pad):
    e_pad = src_bf16.shape[0]
    grid = (n_rows_pad // N_TILE, e_pad // E_TILE)
    return pl.pallas_call(
        _seg_mean_kernel,
        out_shape=jax.ShapeDtypeStruct((n_rows_pad, DIM), jnp.float32),
        grid_spec=pltpu.PrefetchScalarGridSpec(
            num_scalar_prefetch=0, grid=grid,
            in_specs=[pl.BlockSpec((1, E_TILE), lambda i, e: (0, e)),
                      pl.BlockSpec((E_TILE, DIM), lambda i, e: (e, 0)),
                      pl.BlockSpec((E_TILE, DIM), lambda i, e: (e, 0))],
            out_specs=pl.BlockSpec((N_TILE, DIM), lambda i, e: (i, 0)),
            scratch_shapes=[pltpu.VMEM((N_TILE, DIM), jnp.float32),
                            pltpu.VMEM((N_TILE, 1), jnp.float32)]),
        compiler_params=pltpu.CompilerParams(
            dimension_semantics=("parallel", "arbitrary")),
    )(seg, src_bf16, wt_bf16)


# --------------------------------------------------------------------------- #
# Kernel 2: KG hop = scatter_SUM over head of ent[tail]*edge_w, fused with     #
#           L2-normalize + residual-add epilogue.                              #
# --------------------------------------------------------------------------- #
def _kg_hop_kernel(seg_ref, src_ref, wt_ref, res_ref, norm_ref, newres_ref, acc_ref):
    e = pl.program_id(1)

    @pl.when(e == 0)
    def _():
        acc_ref[...] = jnp.zeros_like(acc_ref)

    rows = (pl.program_id(0) * N_TILE
            + jax.lax.broadcasted_iota(jnp.int32, (N_TILE, E_TILE), 0))
    hit = (rows == seg_ref[...]).astype(jnp.bfloat16)
    msg = src_ref[...] * wt_ref[...]                    # bf16 message built in-kernel
    acc_ref[...] += jnp.dot(hit, msg, preferred_element_type=jnp.float32)

    @pl.when(e == pl.num_programs(1) - 1)
    def _():
        acc = acc_ref[...]
        norm = jnp.sqrt(jnp.sum(acc * acc, axis=1, keepdims=True))
        x = acc / jnp.maximum(norm, 1e-12)              # F.normalize(p=2, dim=1)
        norm_ref[...] = x.astype(norm_ref.dtype)        # bf16 ent_cur for the next hop
        newres_ref[...] = res_ref[...] + x              # fp32 residual


def pallas_kg_hop(seg, src_bf16, wt_bf16, res_f32, n_rows_pad):
    e_pad = src_bf16.shape[0]
    grid = (n_rows_pad // N_TILE, e_pad // E_TILE)
    return pl.pallas_call(
        _kg_hop_kernel,
        out_shape=(jax.ShapeDtypeStruct((n_rows_pad, DIM), jnp.bfloat16),
                   jax.ShapeDtypeStruct((n_rows_pad, DIM), jnp.float32)),
        grid_spec=pltpu.PrefetchScalarGridSpec(
            num_scalar_prefetch=0, grid=grid,
            in_specs=[pl.BlockSpec((1, E_TILE), lambda i, e: (0, e)),
                      pl.BlockSpec((E_TILE, DIM), lambda i, e: (e, 0)),
                      pl.BlockSpec((E_TILE, DIM), lambda i, e: (e, 0)),
                      pl.BlockSpec((N_TILE, DIM), lambda i, e: (i, 0))],
            out_specs=(pl.BlockSpec((N_TILE, DIM), lambda i, e: (i, 0)),
                       pl.BlockSpec((N_TILE, DIM), lambda i, e: (i, 0))),
            scratch_shapes=[pltpu.VMEM((N_TILE, DIM), jnp.float32)]),
        compiler_params=pltpu.CompilerParams(
            dimension_semantics=("parallel", "arbitrary")),
    )(seg, src_bf16, wt_bf16, res_f32)


# --------------------------------------------------------------------------- #
# Kernel 3: user aggregation = interact @ ent_cur (tiled, K reduction axis),   #
#           fused with L2-normalize + residual-add epilogue.                   #
# --------------------------------------------------------------------------- #
def _user_agg_kernel(inter_ref, ent_ref, res_ref, out_ref, acc_ref):
    k = pl.program_id(1)

    @pl.when(k == 0)
    def _():
        acc_ref[...] = jnp.zeros_like(acc_ref)

    acc_ref[...] += jnp.dot(inter_ref[...], ent_ref[...],
                            preferred_element_type=jnp.float32)

    @pl.when(k == pl.num_programs(1) - 1)
    def _():
        acc = acc_ref[...]
        norm = jnp.sqrt(jnp.sum(acc * acc, axis=1, keepdims=True))
        out_ref[...] = res_ref[...] + acc / jnp.maximum(norm, 1e-12)


def pallas_user_agg(interact_bf16, ent_bf16, res_f32):
    u_pad, n_pad = interact_bf16.shape
    grid = (u_pad // N_TILE, n_pad // N_TILE)
    return pl.pallas_call(
        _user_agg_kernel,
        out_shape=jax.ShapeDtypeStruct((u_pad, DIM), jnp.float32),
        grid_spec=pltpu.PrefetchScalarGridSpec(
            num_scalar_prefetch=0, grid=grid,
            in_specs=[pl.BlockSpec((N_TILE, N_TILE), lambda i, k: (i, k)),
                      pl.BlockSpec((N_TILE, DIM), lambda i, k: (k, 0)),
                      pl.BlockSpec((N_TILE, DIM), lambda i, k: (i, 0))],
            out_specs=pl.BlockSpec((N_TILE, DIM), lambda i, k: (i, 0)),
            scratch_shapes=[pltpu.VMEM((N_TILE, DIM), jnp.float32)]),
        compiler_params=pltpu.CompilerParams(
            dimension_semantics=("parallel", "arbitrary")),
    )(interact_bf16, ent_bf16, res_f32)


# --------------------------------------------------------------------------- #
# Kernel 4: fused user-specific mask score (lane-dense over entities):         #
#   ent_score[n] = masked-mean_i relu(cos(u_i, agg_n)) + 1e-8                  #
#   mlp[n]       = sigmoid(relu(ent_n @ W1^T) @ w2)        (VPU head, no D=1)  #
#   out[n]       = clip(gamma*ent_score + (1-gamma)*mlp, 0, 1)                 #
# --------------------------------------------------------------------------- #
def _mask_score_kernel(u_ref, m_ref, aggT_ref, entT_ref, w1_ref, w2_ref,
                       score_ref, *, gamma):
    u = u_ref[...]                                       # (B_pad, DIM) f32
    aggT = aggT_ref[...]                                 # (DIM, N_TILE) f32
    dot = jnp.dot(u.astype(jnp.bfloat16), aggT.astype(jnp.bfloat16),
                  preferred_element_type=jnp.float32)    # (B_pad, N_TILE)
    un = jnp.sqrt(jnp.sum(u * u, axis=1, keepdims=True))         # (B_pad, 1)
    an = jnp.sqrt(jnp.sum(aggT * aggT, axis=0, keepdims=True))   # (1, N_TILE)
    cos = dot / jnp.maximum(un * an, 1e-8)
    vals = jnp.maximum(cos, 0.0) + 1e-8
    m = m_ref[...]                                       # 0/1 pair mask (dedup folded in)
    s = jnp.sum(m * vals, axis=0, keepdims=True)         # (1, N_TILE)
    c = jnp.sum(m, axis=0, keepdims=True)
    ent_score = s / jnp.maximum(c, 1.0)

    h = jnp.maximum(jnp.dot(w1_ref[...].astype(jnp.bfloat16),
                            entT_ref[...].astype(jnp.bfloat16),
                            preferred_element_type=jnp.float32), 0.0)   # (DIM, N_TILE)
    logit = jnp.sum(h * w2_ref[...], axis=0, keepdims=True)             # (1, N_TILE)
    mlp = jnp.clip(jax.nn.sigmoid(logit), 0.0, 1.0)
    score_ref[...] = jnp.clip(ent_score * gamma + mlp * (1.0 - gamma), 0.0, 1.0)


def pallas_mask_scores(u_b, m_b, aggT, entT, w1, w2col, gamma):
    b_pad = u_b.shape[0]
    n_pad = m_b.shape[1]
    grid = (n_pad // N_TILE,)
    return pl.pallas_call(
        functools.partial(_mask_score_kernel, gamma=float(gamma)),
        out_shape=jax.ShapeDtypeStruct((1, n_pad), jnp.float32),
        grid_spec=pltpu.PrefetchScalarGridSpec(
            num_scalar_prefetch=0, grid=grid,
            in_specs=[pl.BlockSpec((b_pad, DIM), lambda j: (0, 0)),
                      pl.BlockSpec((b_pad, N_TILE), lambda j: (0, j)),
                      pl.BlockSpec((DIM, N_TILE), lambda j: (0, j)),
                      pl.BlockSpec((DIM, N_TILE), lambda j: (0, j)),
                      pl.BlockSpec((DIM, DIM), lambda j: (0, 0)),
                      pl.BlockSpec((DIM, 1), lambda j: (0, 0))],
            out_specs=pl.BlockSpec((1, N_TILE), lambda j: (0, j))),
        compiler_params=pltpu.CompilerParams(
            dimension_semantics=("parallel",)),
    )(u_b, m_b, aggT, entT, w1, w2col)


# --------------------------------------------------------------------------- #
# Kernel 5: BPR loss (batch is tiny, single block).                            #
# --------------------------------------------------------------------------- #
def _bpr_kernel(u_ref, p_ref, n_ref, mf_ref, reg_ref):
    u = u_ref[...]
    p = p_ref[...]
    n = n_ref[...]
    b = u.shape[0]
    pos = jnp.sum(u * p, axis=1, keepdims=True)
    neg = jnp.sum(u * n, axis=1, keepdims=True)
    x = pos - neg
    logsig = jnp.minimum(x, 0.0) - jnp.log1p(jnp.exp(-jnp.abs(x)))   # stable logsigmoid
    mf_ref[...] = -jnp.sum(logsig, axis=0, keepdims=True) / b
    reg_ref[...] = (jnp.sum(u * u, keepdims=True)
                    + jnp.sum(p * p, keepdims=True)
                    + jnp.sum(n * n, keepdims=True)) * 0.5


def pallas_bpr_loss(u, p, n):
    return pl.pallas_call(
        _bpr_kernel,
        out_shape=(jax.ShapeDtypeStruct((1, 1), jnp.float32),
                   jax.ShapeDtypeStruct((1, 1), jnp.float32)),
        in_specs=[_VMEM(), _VMEM(), _VMEM()],
        out_specs=(_VMEM(), _VMEM()),
    )(u.astype(jnp.float32), p.astype(jnp.float32), n.astype(jnp.float32))


# --------------------------- Recommender (Pallas) ----------------------------
class RecommenderPallas:
    def __init__(self, key, *, n_users, n_items, n_entities, n_relations, dim,
                 context_hops, n_edges, gamma=0.5, decay=1e-4):
        assert dim == DIM
        self.n_users = n_users
        self.n_items = n_items
        self.n_entities = n_entities
        self.n_relations = n_relations
        self.dim = dim
        self.context_hops = context_hops
        self.gamma = gamma
        self.decay = decay

        self.N_pad = _round_up(max(n_entities, N_TILE), N_TILE)
        self.E_pad = _round_up(max(n_edges, E_TILE), E_TILE)
        self.U_pad = _round_up(max(n_users, N_TILE), N_TILE)

        keys = jax.random.split(key, 8)

        def xavier(k, shape):
            bound = math.sqrt(6.0 / (shape[0] + shape[1]))
            return jax.random.uniform(k, shape, jnp.float32, -bound, bound)

        # nn.Parameter(all_embed): (n_nodes, dim); weight: (n_relations-1, dim)
        self.all_embed = xavier(keys[0], (n_users + n_entities, dim))
        self.weight = xavier(keys[1], (n_relations - 1, dim))
        # ScoreEstimator: w1 == layer1.weight (out,in), w2col == layer2.weight^T
        self.w1 = xavier(keys[2], (dim, dim))
        self.w2col = xavier(keys[3], (dim, 1))
        # graph edges: head/tail entity ids, relation type in [1, n_relations)
        self.edge_index = jax.random.randint(keys[4], (2, n_edges), 0, n_entities)
        self.edge_type = jax.random.randint(keys[5], (n_edges,), 1, n_relations)
        # dense stand-ins for the sparse interact_mat / user2ent_mat
        interact = jax.random.bernoulli(keys[6], 0.4, (n_users, n_items)).astype(jnp.float32)
        self.interact_dense = jnp.concatenate(
            [interact, jnp.zeros((n_users, n_entities - n_items), jnp.float32)], axis=1)
        self.user2ent_dense = jax.random.bernoulli(
            keys[7], 0.4, (n_users, n_entities)).astype(jnp.float32)

        # static padded bf16 copy of the interaction matrix (0/1 exact in bf16)
        self.interact_pad_bf16 = jnp.pad(
            self.interact_dense,
            ((0, self.U_pad - n_users), (0, self.N_pad - n_entities))).astype(jnp.bfloat16)

    def forward(self, users, pos_items, neg_items, training_epoch=1):
        nu, ne = self.n_users, self.n_entities
        N_pad, E_pad = self.N_pad, self.E_pad
        E = self.edge_index.shape[1]

        all_embed = self.all_embed
        user_emb = all_embed[:nu]
        entity_emb = all_embed[nu:]
        head = self.edge_index[0].astype(jnp.int32)
        tail = self.edge_index[1].astype(jnp.int32)
        edge_type = self.edge_type

        # padded copies (zero rows; padded edges get segment id -1 => no contribution)
        ent_pad = jnp.pad(entity_emb, ((0, N_pad - ne), (0, 0)))
        ent_pad_bf16 = ent_pad.astype(jnp.bfloat16)
        user_pad = jnp.pad(user_emb, ((0, self.U_pad - nu), (0, 0)))
        rel_emb = jnp.take(self.weight, edge_type - 1, axis=0)            # (E, D)
        rel_pad = jnp.pad(rel_emb, ((0, E_pad - E), (0, 0)))
        tail_pad = jnp.pad(tail, (0, E_pad - E))                          # gather idx
        tail_seg = jnp.pad(tail, (0, E_pad - E), constant_values=-1).reshape(1, E_pad)
        head_seg = jnp.pad(head, (0, E_pad - E), constant_values=-1).reshape(1, E_pad)

        # ---------------- generate_user_specific_mask ----------------
        # ent_agg = scatter_mean(entity_emb[tail] * rel_emb, index=tail)
        src0 = jnp.take(ent_pad_bf16, tail_pad, axis=0)                   # (E_pad, D) bf16
        ent_agg = pallas_segment_mean(tail_seg, src0, rel_pad.astype(jnp.bfloat16), N_pad)

        users_i = users.astype(jnp.int32)
        B = users_i.shape[0]
        B_pad = _round_up(max(B, 8), 8)
        # device-side first-occurrence dedup (replaces host np.unique / np.nonzero)
        eq = (users_i[:, None] == users_i[None, :]).astype(jnp.int32)
        dup = jnp.any(jnp.tril(eq, k=-1) > 0, axis=1)
        dedup = jnp.logical_not(dup).astype(jnp.float32)
        u_batch = jnp.take(all_embed, users_i, axis=0)                    # (B, D)
        m_batch = jnp.take(self.user2ent_dense, users_i, axis=0) * dedup[:, None]
        u_b = jnp.pad(u_batch, ((0, B_pad - B), (0, 0)))
        m_b = jnp.pad(m_batch, ((0, B_pad - B), (0, N_pad - ne)))
        final_score = pallas_mask_scores(u_b, m_b, ent_agg.T, ent_pad.T,
                                         self.w1, self.w2col, self.gamma)[0]   # (N_pad,)
        unmask = jnp.take(final_score, tail, axis=0)                      # agg_n2e='tail'
        # removed_edges = where(edge_score > 0): zero-score edges contribute exactly 0
        # below, so keeping them with weight 0 is equivalent and keeps shapes static.

        # per-edge message weight (unmask * relation emb), hoisted out of the hop loop
        unmask_pad = jnp.pad(unmask, (0, E_pad - E))
        edge_w = (rel_pad * unmask_pad[:, None]).astype(jnp.bfloat16)     # (E_pad, D)

        # ---------------- GraphConv (context_hops) ----------------
        # TODO(synk): mess_dropout / node_dropout (stochastic subsampling) not reproduced.
        ent_cur = ent_pad_bf16
        ent_res = ent_pad
        user_res = user_pad
        for _ in range(self.context_hops):
            src = jnp.take(ent_cur, tail_pad, axis=0)                     # (E_pad, D) bf16
            user_res = pallas_user_agg(self.interact_pad_bf16, ent_cur, user_res)
            ent_cur, ent_res = pallas_kg_hop(head_seg, src, edge_w, ent_res, N_pad)

        # ---------------- create_bpr_loss ----------------
        u_e = jnp.take(user_res, users_i, axis=0)
        pos_e = jnp.take(ent_res, pos_items, axis=0)
        neg_e = jnp.take(ent_res, neg_items, axis=0)
        mf, reg = pallas_bpr_loss(u_e, pos_e, neg_e)
        mf_loss = mf[0, 0]
        emb_loss = self.decay * reg[0, 0] / users.shape[0]
        return mf_loss + emb_loss, mf_loss, emb_loss


# ------------------------ pure-JAX reference (check) -------------------------
def reference_forward(model, users, pos_items, neg_items):
    n_users, n_entities = model.n_users, model.n_entities
    all_embed = model.all_embed
    user_emb = all_embed[:n_users]
    entity_emb = all_embed[n_users:]
    head, tail = model.edge_index[0], model.edge_index[1]
    edge_type = model.edge_type
    gamma = model.gamma

    u = np.unique(np.asarray(users))
    u2batch = np.zeros((u.shape[0], n_users), np.float32)
    u2batch[np.arange(u.shape[0]), u] = 1.0
    batch_u2e = u2batch @ np.asarray(model.user2ent_dense)
    batch_row, batch_col = np.nonzero(batch_u2e > 0)
    batch_row = jnp.asarray(batch_row, jnp.int32)
    batch_col = jnp.asarray(batch_col, jnp.int32)

    def seg_mean(src, idx, n):
        s = jax.ops.segment_sum(src, idx, n)
        c = jax.ops.segment_sum(jnp.ones((src.shape[0], 1), jnp.float32), idx, n)
        return s / jnp.maximum(c, 1.0)

    rel_emb = jnp.take(model.weight, edge_type - 1, axis=0)
    neigh = jnp.take(entity_emb, tail, axis=0) * rel_emb
    ent_agg = seg_mean(neigh, tail, n_entities)
    user_rows = jnp.take(all_embed, jnp.asarray(u, jnp.int32), axis=0)
    a = jnp.take(user_rows, batch_row, axis=0)
    b = jnp.take(ent_agg, batch_col, axis=0)
    dot = jnp.sum(a * b, axis=1)
    denom = jnp.maximum(jnp.linalg.norm(a, axis=1) * jnp.linalg.norm(b, axis=1), 1e-8)
    vals = jnp.maximum(dot / denom, 0.0) + 1e-8
    ent_score = seg_mean(vals[:, None], batch_col, n_entities)[:, 0]
    h = jnp.maximum(entity_emb @ model.w1.T, 0.0)
    mlp_score = jnp.clip(jax.nn.sigmoid(h @ model.w2col)[:, 0], 0.0, 1.0)
    final = jnp.clip(ent_score * gamma + mlp_score * (1.0 - gamma), 0.0, 1.0)
    unmask = jnp.take(final, tail, axis=0)

    def normalize(x):
        n = jnp.sqrt(jnp.sum(x * x, axis=1, keepdims=True))
        return x / jnp.maximum(n, 1e-12)

    ent_res, user_res = entity_emb, user_emb
    ent_cur = entity_emb
    for _ in range(model.context_hops):
        msg = jnp.take(ent_cur, tail, axis=0) * unmask[:, None] * rel_emb
        entity_agg = jax.ops.segment_sum(msg, head, n_entities)
        user_agg = model.interact_dense @ ent_cur
        ent_cur = normalize(entity_agg)
        ent_res = ent_res + ent_cur
        user_res = user_res + normalize(user_agg)

    u_e = jnp.take(user_res, users, axis=0)
    p_e = jnp.take(ent_res, pos_items, axis=0)
    n_e = jnp.take(ent_res, neg_items, axis=0)
    pos = jnp.sum(u_e * p_e, axis=1)
    neg = jnp.sum(u_e * n_e, axis=1)
    mf = -jnp.mean(jax.nn.log_sigmoid(pos - neg))
    reg = (jnp.sum(u_e ** 2) + jnp.sum(p_e ** 2) + jnp.sum(n_e ** 2)) / 2.0
    emb = model.decay * reg / users.shape[0]
    return mf + emb, mf, emb


# ------------------------------------ main -----------------------------------
if __name__ == "__main__":
    key = jax.random.PRNGKey(0)
    k_model, k_batch = jax.random.split(key)

    n_users, n_items, n_entities = 8, 8, 16
    model = RecommenderPallas(
        k_model, n_users=n_users, n_items=n_items, n_entities=n_entities,
        n_relations=4, dim=64, context_hops=2, n_edges=32, gamma=0.5, decay=1e-4)

    kb1, kb2, kb3 = jax.random.split(k_batch, 3)
    users = jax.random.randint(kb1, (4,), 0, n_users)
    pos_items = jax.random.randint(kb2, (4,), 0, n_items)
    neg_items = jax.random.randint(kb3, (4,), 0, n_items)

    total, mf, emb = model.forward(users, pos_items, neg_items, training_epoch=1)
    jax.block_until_ready(total)

    total_r, mf_r, emb_r = reference_forward(model, users, pos_items, neg_items)
    # bf16 MXU inputs (fp32 accumulation) -> slightly looser tolerance than pure fp32
    assert np.allclose(np.asarray(total), np.asarray(total_r), rtol=2e-2, atol=2e-2)
    assert np.allclose(np.asarray(mf), np.asarray(mf_r), rtol=2e-2, atol=2e-2)
    assert np.allclose(np.asarray(emb), np.asarray(emb_r), rtol=2e-2, atol=2e-2)

    print("KERNEL_OK")
</pallas_src>

<mosaic_0001>
module attributes {stable_mosaic.version = 11 : i64} {
  func.func @_seg_mean_kernel(%arg0: i32, %arg1: i32, %arg2: memref<1x512xi32, #tpu.memory_space<vmem>>, %arg3: memref<512x64xbf16, #tpu.memory_space<vmem>>, %arg4: memref<512x64xbf16, #tpu.memory_space<vmem>>, %arg5: memref<128x64xf32, #tpu.memory_space<vmem>>, %arg6: memref<128x64xf32, #tpu.memory_space<vmem>>, %arg7: memref<128x1xf32, #tpu.memory_space<vmem>>) attributes {dimension_semantics = [#tpu.dimension_semantics<parallel>, #tpu.dimension_semantics<arbitrary>], iteration_bounds = array<i64: 1, 1>, scalar_prefetch = 0 : i64, scratch_operands = 2 : i64, tpu.core_type = #tpu.core_type<tc>, window_params = [{transform_indices = @transform_0, window_bounds = array<i64: 1, 512>}, {transform_indices = @transform_1, window_bounds = array<i64: 512, 64>}, {transform_indices = @transform_2, window_bounds = array<i64: 512, 64>}, {transform_indices = @transform_3, window_bounds = array<i64: 128, 64>}]} {
    %c0_i32 = arith.constant 0 : i32
    %0 = arith.cmpi eq, %arg1, %c0_i32 : i32
    %1 = arith.extui %0 : i1 to i32
    %c0_i32_0 = arith.constant 0 : i32
    %2 = arith.cmpi ne, %1, %c0_i32_0 : i32
    scf.if %2 {
      %cst_17 = arith.constant 0.000000e+00 : f32
      %30 = vector.broadcast %cst_17 : f32 to vector<128x64xf32>
      %c0_18 = arith.constant 0 : index
      %c0_19 = arith.constant 0 : index
      %31 = vector.load %arg6[%c0_18, %c0_19] : memref<128x64xf32, #tpu.memory_space<vmem>>, vector<128x64xf32>
      tpu.vector_store %arg6[%c0_18, %c0_19], %30 {strides = array<i32>} : memref<128x64xf32, #tpu.memory_space<vmem>>, vector<128x64xf32>,
      %cst_20 = arith.constant 0.000000e+00 : f32
      %32 = vector.broadcast %cst_20 : f32 to vector<128x1xf32>
      %c0_21 = arith.constant 0 : index
      %c0_22 = arith.constant 0 : index
      %33 = vector.load %arg7[%c0_21, %c0_22] : memref<128x1xf32, #tpu.memory_space<vmem>>, vector<128x1xf32>
      tpu.vector_store %arg7[%c0_21, %c0_22], %32 {strides = array<i32>} : memref<128x1xf32, #tpu.memory_space<vmem>>, vector<128x1xf32>,
    } else {
    }
    %c128_i32 = arith.constant 128 : i32
    %3 = arith.muli %arg0, %c128_i32 : i32
    %4 = tpu.iota {dimensions = array<i32: 0>} : vector<128x512xi32>
    %5 = vector.broadcast %3 : i32 to vector<128x512xi32>
    %6 = arith.addi %5, %4 : vector<128x512xi32>
    %c0 = arith.constant 0 : index
    %c0_1 = arith.constant 0 : index
    %7 = vector.load %arg2[%c0, %c0_1] : memref<1x512xi32, #tpu.memory_space<vmem>>, vector<1x512xi32>
    %8 = vector.broadcast %7 : vector<1x512xi32> to vector<128x512xi32>
    %9 = arith.cmpi eq, %6, %8 : vector<128x512xi32>
    %c0_2 = arith.constant 0 : index
    %c0_3 = arith.constant 0 : index
    %10 = vector.load %arg3[%c0_2, %c0_3] : memref<512x64xbf16, #tpu.memory_space<vmem>>, vector<512x64xbf16>
    %c0_4 = arith.constant 0 : index
    %c0_5 = arith.constant 0 : index
    %11 = vector.load %arg4[%c0_4, %c0_5] : memref<512x64xbf16, #tpu.memory_space<vmem>>, vector<512x64xbf16>
    %12 = arith.mulf %10, %11 : vector<512x64xbf16>
    %c0_6 = arith.constant 0 : index
    %c0_7 = arith.constant 0 : index
    %13 = vector.load %arg6[%c0_6, %c0_7] : memref<128x64xf32, #tpu.memory_space<vmem>>, vector<128x64xf32>
    %14 = arith.extui %9 : vector<128x512xi1> to vector<128x512xi32>
    %15 = arith.sitofp %14 : vector<128x512xi32> to vector<128x512xf32>
    %16 = arith.truncf %15 : vector<128x512xf32> to vector<128x512xbf16>
    %cst = arith.constant dense<0.000000e+00> : vector<128x64xf32>
    %17 = tpu.matmul %16, %12, %cst {dimension_numbers = #tpu.dot_dimension_numbers<[1], [0], [0], [1], [0, 0, 1, 1], [], []>} : vector<128x512xbf16>, vector<512x64xbf16>, vector<128x64xf32> -> vector<128x64xf32>
    %18 = arith.addf %13, %17 : vector<128x64xf32>
    %c0_8 = arith.constant 0 : index
    %c0_9 = arith.constant 0 : index
    %19 = vector.load %arg6[%c0_8, %c0_9] : memref<128x64xf32, #tpu.memory_space<vmem>>, vector<128x64xf32>
    tpu.vector_store %arg6[%c0_8, %c0_9], %18 {strides = array<i32>} : memref<128x64xf32, #tpu.memory_space<vmem>>, vector<128x64xf32>,
    %c0_10 = arith.constant 0 : index
    %c0_11 = arith.constant 0 : index
    %20 = vector.load %arg7[%c0_10, %c0_11] : memref<128x1xf32, #tpu.memory_space<vmem>>, vector<128x1xf32>
    %21 = arith.extui %9 : vector<128x512xi1> to vector<128x512xi32>
    %22 = arith.sitofp %21 : vector<128x512xi32> to vector<128x512xf32>
    %cst_12 = arith.constant dense<0.000000e+00> : vector<128xf32>
    %23 = vector.multi_reduction <add>, %22, %cst_12 [1] : vector<128x512xf32> to vector<128xf32>
    %24 = vector.shape_cast %23 : vector<128xf32> to vector<128x1xf32>
    %25 = arith.addf %20, %24 : vector<128x1xf32>
    %c0_13 = arith.constant 0 : index
    %c0_14 = arith.constant 0 : index
    %26 = vector.load %arg7[%c0_13, %c0_14] : memref<128x1xf32, #tpu.memory_space<vmem>>, vector<128x1xf32>
    tpu.vector_store %arg7[%c0_13, %c0_14], %25 {strides = array<i32>} : memref<128x1xf32, #tpu.memory_space<vmem>>, vector<128x1xf32>,
    %c0_i32_15 = arith.constant 0 : i32
    %27 = arith.cmpi eq, %arg1, %c0_i32_15 : i32
    %28 = arith.extui %27 : i1 to i32
    %c0_i32_16 = arith.constant 0 : i32
    %29 = arith.cmpi ne, %28, %c0_i32_16 : i32
    scf.if %29 {
      %c0_17 = arith.constant 0 : index
      %c0_18 = arith.constant 0 : index
      %30 = vector.load %arg6[%c0_17, %c0_18] : memref<128x64xf32, #tpu.memory_space<vmem>>, vector<128x64xf32>
      %c0_19 = arith.constant 0 : index
      %c0_20 = arith.constant 0 : index
      %31 = vector.load %arg7[%c0_19, %c0_20] : memref<128x1xf32, #tpu.memory_space<vmem>>, vector<128x1xf32>
      %cst_21 = arith.constant 1.000000e+00 : f32
      %32 = vector.broadcast %cst_21 : f32 to vector<128x1xf32>
      %33 = arith.maximumf %31, %32 : vector<128x1xf32>
      %34 = vector.broadcast %33 : vector<128x1xf32> to vector<128x64xf32>
      %35 = arith.divf %30, %34 : vector<128x64xf32>
      %c0_22 = arith.constant 0 : index
      %c0_23 = arith.constant 0 : index
      %36 = vector.load %arg5[%c0_22, %c0_23] : memref<128x64xf32, #tpu.memory_space<vmem>>, vector<128x64xf32>
      tpu.vector_store %arg5[%c0_22, %c0_23], %35 {strides = array<i32>} : memref<128x64xf32, #tpu.memory_space<vmem>>, vector<128x64xf32>,
    } else {
    }
    return
  }
  func.func @transform_0(%arg0: i32, %arg1: i32) -> (i32, i32) {
    %c0_i32 = arith.constant 0 : i32
    %c0_i32_0 = arith.constant 0 : i32
    return %c0_i32, %arg1 : i32, i32
  }
  func.func @transform_1(%arg0: i32, %arg1: i32) -> (i32, i32) {
    %c0_i32 = arith.constant 0 : i32
    %c0_i32_0 = arith.constant 0 : i32
    return %arg1, %c0_i32 : i32, i32
  }
  func.func @transform_2(%arg0: i32, %arg1: i32) -> (i32, i32) {
    %c0_i32 = arith.constant 0 : i32
    %c0_i32_0 = arith.constant 0 : i32
    return %arg1, %c0_i32 : i32, i32
  }
  func.func @transform_3(%arg0: i32, %arg1: i32) -> (i32, i32) {
    %c0_i32 = arith.constant 0 : i32
    %c0_i32_0 = arith.constant 0 : i32
    return %arg0, %c0_i32 : i32, i32
  }
}

</mosaic_0001>

<bundles_post_ra>
// kernel: tpu_custom_call.1
= control target key start
LH: loop header
LB: loop body
LE: loop exit
PB: predicated region body
PF: predicated region fallthrough
CT: control target
= control target key end

     0   :  { %v54_v0 = vlaneseq  ;;  %vm2885_vm0 = vcmask 7168   ;;  %v1593_v12 = vmov 0.0   ;;  %s2881_s0 = inlined_call_operand.vmem [shape: s32[1,512], index: 0, kind: input, shape index: {}]   ;;  %s2882_s1 = inlined_call_operand.vmem [shape: bf16[512,64], index: 1, kind: input, shape index: {}]   ;;  %s2883_s2 = inlined_call_operand.vmem [shape: bf16[512,64], index: 2, kind: input, shape index: {}]   ;;  %s2884_s3 = inlined_call_operand.vmem [shape: f32[128,64], index: 3, kind: output, shape index: {}]  }
   0x1   :  { %v88_v1 = vld [vmem:[%s2881_s0] sm:$0xf]  ;;  %v186_v3 = vld [vmem:[%s2882_s1 + $0x44] sm:$0xf]  ;;  %39 = vst.msk [vmem:[#allocation3 + $0x10] sm:$0xff] %vm2885_vm0, %v1593_v12  ;;  %37 = vst.msk [vmem:[#allocation3] sm:$0xff] %vm2885_vm0, %v1593_v12 }
   0x2   :  { %v185_v2 = vld [vmem:[%s2882_s1 + $0x40] sm:$0xf]  ;;  %v1625_v4 = vshrl.u32 %v54_v0, 7  ;;  %v250_v6 = vld [vmem:[%s2883_s2 + $0x44] sm:$0xf]  ;;  %38 = vst.msk [vmem:[#allocation3 + $0x8] sm:$0xff] %vm2885_vm0, %v1593_v12 }
   0x3   :  { %v249_v5 = vld [vmem:[%s2883_s2 + $0x40] sm:$0xf]  ;;  %v314_v8 = vmul.bf16 %v250_v6, %v186_v3  ;;  %v218_v10 = vld [vmem:[%s2882_s1 + $0xc4] sm:$0xf]  ;;  %40 = vst.msk [vmem:[#allocation3 + $0x18] sm:$0xff] %vm2885_vm0, %v1593_v12  ;;  %41 = vst.msk [vmem:[#allocation3 + $0x20] sm:$0xff] %vm2885_vm0, %v1593_v12 }
   0x4   :  { %v313_v7 = vmul.bf16 %v249_v5, %v185_v2  ;;  %v217_v9 = vld [vmem:[%s2882_s1 + $0xc0] sm:$0xf]  ;;  %42 = vst.msk [vmem:[#allocation3 + $0x28] sm:$0xff] %vm2885_vm0, %v1593_v12  ;;  %43 = vst.msk [vmem:[#allocation3 + $0x30] sm:$0xff] %vm2885_vm0, %v1593_v12  ;;  %v1675_v13 = vadd.s32 16, %v1625_v4  ;;  %v1678_v14 = vadd.s32 24, %v1625_v4 }
   0x5   :  { %v281_v11 = vld [vmem:[%s2883_s2 + $0xc0] sm:$0xf]  ;;  %44 = vst.msk [vmem:[#allocation3 + $0x38] sm:$0xff] %vm2885_vm0, %v1593_v12  ;;  %45 = vst.msk [vmem:[#allocation3 + $0x40] sm:$0xff] %vm2885_vm0, %v1593_v12  ;;  %v91_v15 = vsub.s32 0, %v1625_v4  ;;  %v95_v16 = vsub.s32 1, %v1625_v4 }
   0x6   :  { %46 = vst.msk [vmem:[#allocation3 + $0x48] sm:$0xff] %vm2885_vm0, %v1593_v12  ;;  %47 = vst.msk [vmem:[#allocation3 + $0x50] sm:$0xff] %vm2885_vm0, %v1593_v12  ;;  %v282_v17 = vld [vmem:[%s2883_s2 + $0xc4] sm:$0xf]  ;;  %v99_v18 = vsub.s32 2, %v1625_v4  ;;  %v103_v19 = vsub.s32 3, %v1625_v4  ;;  %v1340_v20 = vcombine.low %v313_v7, %v314_v8  ;;  %v345_v21 = vmul.bf16 %v281_v11, %v217_v9 }
   0x7   :  { %48 = vst.msk [vmem:[#allocation3 + $0x58] sm:$0xff] %vm2885_vm0, %v1593_v12  ;;  %49 = vst.msk [vmem:[#allocation3 + $0x60] sm:$0xff] %vm2885_vm0, %v1593_v12  ;;  %v1690_v22 = vld [vmem:[%s2882_s1] sm:$0xf]  ;;  %v1695_v23 = vld [vmem:[%s2882_s1 + $0x4] sm:$0xf]  ;;  %v1697_v24 = vrot.slane %v88_v1, %v91_v15  ;;  %v1699_v25 = vrot.slane %v88_v1, %v95_v16  ;;  %v346_v26 = vmul.bf16 %v282_v17, %v218_v10 }
   0x8   :  { %50 = vst.msk [vmem:[#allocation3 + $0x68] sm:$0xff] %vm2885_vm0, %v1593_v12  ;;  %51 = vst.msk [vmem:[#allocation3 + $0x70] sm:$0xff] %vm2885_vm0, %v1593_v12  ;;  %v1702_v27 = vadd.s32 8, %v1625_v4  ;;  %v1707_v28 = vld [vmem:[%s2883_s2] sm:$0xf]  ;;  %v1714_v30 = vrot.slane %v88_v1, %v99_v18  ;;  %v1716_v31 = vrot.slane %v88_v1, %v103_v19  ;;  %1428 = vmatprep.subr.bf16.mxu0 %v1340_v20 }
   0x9   :  { %52 = vst.msk [vmem:[#allocation3 + $0x78] sm:$0xff] %vm2885_vm0, %v1593_v12  ;;  %v1712_v29 = vld [vmem:[%s2883_s2 + $0x4] sm:$0xf]  ;;  %v297_v32 = vmul.bf16 %v1707_v28, %v1690_v22  ;;  %vm113_vm1 = vcmp.eq.s32.totalorder %v1675_v13, %v1697_v24  ;;  %vm114_vm2 = vcmp.eq.s32.totalorder %v1675_v13, %v1699_v25  ;;  %vm105_vm3 = vcmp.eq.s32.totalorder %v1625_v4, %v1697_v24  ;;  %v201_v46 = vld [vmem:[%s2882_s1 + $0x80] sm:$0xf] }
   0xa   :  { %v298_v33 = vmul.bf16 %v1712_v29, %v1695_v23  ;;  %vm106_vm4 = vcmp.eq.s32.totalorder %v1625_v4, %v1699_v25  ;;  %vm115_vm5 = vcmp.eq.s32.totalorder %v1675_v13, %v1714_v30  ;;  %vm116_vm6 = vcmp.eq.s32.totalorder %v1675_v13, %v1716_v31  ;;  %v265_v47 = vld [vmem:[%s2883_s2 + $0x80] sm:$0xf]  ;;  %v202_v52 = vld [vmem:[%s2882_s1 + $0x84] sm:$0xf]  ;;  %v187_v54 = vld [vmem:[%s2882_s1 + $0x48] sm:$0xf] }
   0xb   :  { %vm2886_vm7 = vcmp.eq.s32.totalorder %v1678_v14, %v1716_v31  ;;  %v1276_v34 = vsel %vm113_vm1, 1.0, %v1593_v12  ;;  %v1277_v35 = vsel %vm114_vm2, 1.0, %v1593_v12  ;;  %v1278_v36 = vsel %vm115_vm5, 1.0, %v1593_v12  ;;  %v266_v53 = vld [vmem:[%s2883_s2 + $0x84] sm:$0xf] }
   0xc   :  { %v1279_v37 = vsel %vm116_vm6, 1.0, %v1593_v12  ;;  %vm107_vm8 = vcmp.eq.s32.totalorder %v1625_v4, %v1714_v30  ;;  %v982_v38 = vadd.f32 %v1277_v35, %v1276_v34  ;;  %vm108_vm9 = vcmp.eq.s32.totalorder %v1625_v4, %v1716_v31  ;;  %v188_v55 = vld [vmem:[%s2882_s1 + $0x4c] sm:$0xf]  ;;  %v251_v56 = vld [vmem:[%s2883_s2 + $0x48] sm:$0xf] }
   0xd   :  { %v1268_v39 = vsel %vm105_vm3, 1.0, %v1593_v12  ;;  %v1269_v40 = vsel %vm106_vm4, 1.0, %v1593_v12  ;;  %v1270_v41 = vsel %vm107_vm8, 1.0, %v1593_v12  ;;  %v1271_v42 = vsel %vm108_vm9, 1.0, %v1593_v12  ;;  %v252_v57 = vld [vmem:[%s2883_s2 + $0x4c] sm:$0xf] }
   0xe   :  { %v972_v43 = vadd.f32 %v1269_v40, %v1268_v39  ;;  %v1356_v44 = vcombine.low %v345_v21, %v346_v26  ;;  %v983_v45 = vadd.f32 %v1278_v36, %v982_v38  ;;  %vm117_vm10 = vcmp.eq.s32.totalorder %v1678_v14, %v1697_v24  ;;  %v219_v61 = vld [vmem:[%s2882_s1 + $0xc8] sm:$0xf]  ;;  %v220_v62 = vld [vmem:[%s2882_s1 + $0xcc] sm:$0xf]  ;;  %v190_v38 = vld [vmem:[%s2882_s1 + $0x54] sm:$0xf] }
   0xf   :  { %vm118_vm11 = vcmp.eq.s32.totalorder %v1678_v14, %v1699_v25  ;;  %vm119_vm12 = vcmp.eq.s32.totalorder %v1678_v14, %v1714_v30  ;;  %v1280_v49 = vsel %vm117_vm10, 1.0, %v1593_v12  ;;  %v1283_v59 = vsel %vm2886_vm7, 1.0, %v1593_v12  ;;  %vm1832_vm14 = vmpackc.low %vm117_vm10, %vm113_vm1  ;;  %v283_v1 = vld [vmem:[%s2883_s2 + $0xc8] sm:$0xf]  ;;  %v284_v2 = vld [vmem:[%s2883_s2 + $0xcc] sm:$0xf] }
  0x10   :  { %v973_v48 = vadd.f32 %v1270_v41, %v972_v43  ;;  %1492 = vmatprep.subr.bf16.mxu1 %v1356_v44  ;;  %v1281_v50 = vsel %vm118_vm11, 1.0, %v1593_v12  ;;  %v1282_v51 = vsel %vm119_vm12, 1.0, %v1593_v12  ;;  %v984_v58 = vadd.f32 %v1279_v37, %v983_v45  ;;  %v1851_v3 = vld [vmem:[%s2882_s1 + $0x8] sm:$0xf]  ;;  %v172_v9 = vld [vmem:[%s2882_s1 + $0xc] sm:$0xf] }
  0x11   :  { %v987_v60 = vadd.f32 %v1281_v50, %v1280_v49  ;;  %vm109_vm13 = vcmp.eq.s32.totalorder %v1702_v27, %v1697_v24  ;;  %vm110_vm15 = vcmp.eq.s32.totalorder %v1702_v27, %v1699_v25  ;;  %vm111_vm0 = vcmp.eq.s32.totalorder %v1702_v27, %v1714_v30  ;;  %v235_v17 = vld [vmem:[%s2883_s2 + $0x8] sm:$0xf]  ;;  %v236_v18 = vld [vmem:[%s2883_s2 + $0xc] sm:$0xf]  ;;  %v189_v37 = vld [vmem:[%s2882_s1 + $0x50] sm:$0xf] }
  0x12   :  { %v974_v0 = vadd.f32 %v1271_v42, %v973_v48  ;;  %vm112_vm7 = vcmp.eq.s32.totalorder %v1702_v27, %v1716_v31  ;;  %985 = vadd.xlane.f32.xlu1 %v984_v58  ;;  %v1272_v6 = vsel %vm109_vm13, 1.0, %v1593_v12  ;;  %v1273_v7 = vsel %vm110_vm15, 1.0, %v1593_v12  ;;  %vm1364_vm1 = vmpackc.low %vm110_vm15, %vm106_vm4  ;;  %v204_v34 = vld [vmem:[%s2882_s1 + $0x8c] sm:$0xf]  ;;  %v267_v35 = vld [vmem:[%s2883_s2 + $0x88] sm:$0xf] }
  0x13   :  { %v988_v5 = vadd.f32 %v1282_v51, %v987_v60  ;;  %v1274_v8 = vsel %vm111_vm0, 1.0, %v1593_v12  ;;  %v1275_v10 = vsel %vm112_vm7, 1.0, %v1593_v12  ;;  %v977_v11 = vadd.f32 %v1273_v7, %v1272_v6  ;;  %vm1396_vm4 = vmpackc.low %vm112_vm7, %vm108_vm9  ;;  %v268_v36 = vld [vmem:[%s2883_s2 + $0x8c] sm:$0xf]  ;;  %v253_v43 = vld [vmem:[%s2883_s2 + $0x50] sm:$0xf] }
  0x14   :  { %975 = vadd.xlane.f32.xlu0 %v974_v0  ;;  %v1332_v15 = vcombine.low %v297_v32, %v298_v33  ;;  %v329_v16 = vmul.bf16 %v265_v47, %v201_v46  ;;  %v1594_v19 = vmov 1.0|1.0   ;;  %v330_v21 = vmul.bf16 %v266_v53, %v202_v52  ;;  %v203_v33 = vld [vmem:[%s2882_s1 + $0x88] sm:$0xf]  ;;  %v254_v44 = vld [vmem:[%s2883_s2 + $0x54] sm:$0xf] }
  0x15   :  { %1365 = vmatprep.mubr.msk.bf16.mxu0 %vm1364_vm1, %v1594_v19  ;;  %v989_v20 = vadd.f32 %v1283_v59, %v988_v5  ;;  %v315_v22 = vmul.bf16 %v251_v56, %v187_v54  ;;  %v316_v23 = vmul.bf16 %v252_v57, %v188_v55  ;;  %1397 = vmatprep.mubr.msk.bf16.mxu1 %vm1396_vm4, %v1594_v19  ;;  %v1890_v32 = vadd.s32 40, %v1625_v4  ;;  %v221_v45 = vld [vmem:[%s2882_s1 + $0xd0] sm:$0xf]  ;;  %v222_v48 = vld [vmem:[%s2882_s1 + $0xd4] sm:$0xf]  ;;  %vm1971_vm1 = vmpackc.low %vm119_vm12, %vm115_vm5 }
  0x16   :  { %v978_v26 = vadd.f32 %v1274_v8, %v977_v11  ;;  %1429 = vmatpush3.bf16.msra.mxu0 %v1332_v15  ;;  %v347_v28 = vmul.bf16 %v283_v1, %v219_v61  ;;  %v348_v29 = vmul.bf16 %v284_v2, %v220_v62  ;;  %v1348_v39 = vcombine.low %v329_v16, %v330_v21  ;;  %v285_v49 = vld [vmem:[%s2883_s2 + $0xd0] sm:$0xf]  ;;  %v286_v50 = vld [vmem:[%s2883_s2 + $0xd4] sm:$0xf]  ;;  %v192_v21 = vld [vmem:[%s2882_s1 + $0x5c] sm:$0xf] }
  0x17   :  { %990 = vadd.xlane.f32.xlu1 %v989_v20  ;;  %v1341_v40 = vcombine.low %v315_v22, %v316_v23  ;;  %v299_v41 = vmul.bf16 %v235_v17, %v1851_v3  ;;  %v300_v42 = vmul.bf16 %v236_v18, %v172_v9  ;;  %vm2897_vm7 = vcmp.eq.s32.totalorder %v1890_v32, %v1697_v24  ;;  %v173_v53 = vld [vmem:[%s2882_s1 + $0x10] sm:$0xf]  ;;  %v174_v54 = vld [vmem:[%s2882_s1 + $0x14] sm:$0xf]  ;;  %v191_v20 = vld [vmem:[%s2882_s1 + $0x58] sm:$0xf] }
  0x18   :  { %v979_v46 = vadd.f32 %v1275_v10, %v978_v26  ;;  %v1357_v47 = vcombine.low %v347_v28, %v348_v29  ;;  %vm126_vm9 = vcmp.eq.s32.totalorder %v1890_v32, %v1699_v25  ;;  %1493 = vmatpush3.bf16.msra.mxu1 %v1348_v39  ;;  %vm2887_vm10 = vcmp.eq.s32.totalorder %v1890_v32, %v1714_v30  ;;  %v237_v59 = vld [vmem:[%s2883_s2 + $0x10] sm:$0xf]  ;;  %v238_v60 = vld [vmem:[%s2883_s2 + $0x14] sm:$0xf]  ;;  %v255_v22 = vld [vmem:[%s2883_s2 + $0x58] sm:$0xf] }
  0x19   :  { %1430 = vmatprep.subr.bf16.mxu0 %v1341_v40  ;;  %vm2899_vm15 = vcmp.eq.s32.totalorder %v1890_v32, %v1716_v31  ;;  %v1288_v51 = vsel %vm2897_vm7, 1.0, %v1593_v12  ;;  %v1289_v52 = vsel %vm126_vm9, 1.0, %v1593_v12  ;;  %v1290_v55 = vsel %vm2887_vm10, 1.0, %v1593_v12  ;;  %v205_v8 = vld [vmem:[%s2882_s1 + $0x90] sm:$0xf] }
  0x1a   :  { %980 = vadd.xlane.f32.xlu0 %v979_v46  ;;  %1494 = vmatprep.subr.bf16.mxu1 %v1357_v47  ;;  %v1291_v56 = vsel %vm2899_vm15, 1.0, %v1593_v12  ;;  %v997_v57 = vadd.f32 %v1289_v52, %v1288_v51  ;;  %v1333_v58 = vcombine.low %v299_v41, %v300_v42  ;;  %v331_v62 = vmul.bf16 %v267_v35, %v203_v33  ;;  %v206_v9 = vld [vmem:[%s2882_s1 + $0x94] sm:$0xf]  ;;  %v269_v10 = vld [vmem:[%s2883_s2 + $0x90] sm:$0xf] }
  0x1b   :  { %v332_v0 = vmul.bf16 %v268_v36, %v204_v34  ;;  %v317_v1 = vmul.bf16 %v253_v43, %v189_v37  ;;  %v318_v2 = vmul.bf16 %v254_v44, %v190_v38  ;;  %v349_v5 = vmul.bf16 %v285_v49, %v221_v45  ;;  %v270_v11 = vld [vmem:[%s2883_s2 + $0x94] sm:$0xf]  ;;  %v256_v28 = vld [vmem:[%s2883_s2 + $0x5c] sm:$0xf]  ;;  %v223_v29 = vld [vmem:[%s2882_s1 + $0xd8] sm:$0xf] }
  0x1c   :  { %v998_v3 = vadd.f32 %v1290_v55, %v997_v57  ;;  %1431 = vmatpush3.bf16.msra.mxu0 %v1333_v58  ;;  %v350_v6 = vmul.bf16 %v286_v50, %v222_v48  ;;  %v1976_v7 = vadd.s32 56, %v1625_v4  ;;  %v301_v17 = vmul.bf16 %v237_v59, %v173_v53  ;;  %v224_v33 = vld [vmem:[%s2882_s1 + $0xdc] sm:$0xf]  ;;  %v287_v36 = vld [vmem:[%s2883_s2 + $0xd8] sm:$0xf] }
  0x1d   :  { %v1349_v15 = vcombine.low %v331_v62, %v332_v0  ;;  %v1342_v16 = vcombine.low %v317_v1, %v318_v2  ;;  %v302_v18 = vmul.bf16 %v238_v60, %v174_v54  ;;  %v288_v37 = vld [vmem:[%s2883_s2 + $0xdc] sm:$0xf]  ;;  %v2041_v42 = vld [vmem:[%s2882_s1 + $0x18] sm:$0xf]  ;;  %v333_v44 = vmul.bf16 %v269_v10, %v205_v8  ;;  %v257_v8 = vld [vmem:[%s2883_s2 + $0x60] sm:$0xf] }
  0x1e   :  { %v999_v23 = vadd.f32 %v1291_v56, %v998_v3  ;;  %v1358_v26 = vcombine.low %v349_v5, %v350_v6  ;;  %vm2889_vm5 = vcmp.eq.s32.totalorder %v1976_v7, %v1697_v24  ;;  %vm2891_vm12 = vcmp.eq.s32.totalorder %v1976_v7, %v1699_v25  ;;  %v2046_v43 = vld [vmem:[%s2883_s2 + $0x18] sm:$0xf]  ;;  %v176_v58 = vld [vmem:[%s2882_s1 + $0x1c] sm:$0xf]  ;;  %v193_v5 = vld [vmem:[%s2882_s1 + $0x60] sm:$0xf] }
  0x1f   :  { %1495 = vmatpush3.bf16.msra.mxu1 %v1349_v15  ;;  %1432 = vmatprep.subr.bf16.mxu0 %v1342_v16  ;;  %vm2888_vm4 = vcmp.eq.s32.totalorder %v1976_v7, %v1714_v30  ;;  %vm2890_vm10 = vcmp.eq.s32.totalorder %v1976_v7, %v1716_v31  ;;  %v1296_v34 = vsel %vm2889_vm5, 1.0, %v1593_v12  ;;  %v1297_v35 = vsel %vm2891_vm12, 1.0, %v1593_v12  ;;  %v240_v59 = vld [vmem:[%s2883_s2 + $0x1c] sm:$0xf]  ;;  %v207_v60 = vld [vmem:[%s2882_s1 + $0x98] sm:$0xf] }
  0x20   :  { %1000 = vadd.xlane.f32.xlu1 %v999_v23  ;;  %1496 = vmatprep.subr.bf16.mxu1 %v1358_v26  ;;  %v1298_v38 = vsel %vm2888_vm4, 1.0, %v1593_v12  ;;  %v1299_v39 = vsel %vm2890_vm10, 1.0, %v1593_v12  ;;  %v1007_v40 = vadd.f32 %v1297_v35, %v1296_v34  ;;  %v1334_v41 = vcombine.low %v301_v17, %v302_v18  ;;  %v208_v62 = vld [vmem:[%s2882_s1 + $0x9c] sm:$0xf]  ;;  %v271_v0 = vld [vmem:[%s2883_s2 + $0x98] sm:$0xf] }
  0x21   :  { %v334_v45 = vmul.bf16 %v270_v11, %v206_v9  ;;  %v319_v46 = vmul.bf16 %v255_v22, %v191_v20  ;;  %v320_v47 = vmul.bf16 %v256_v28, %v192_v21  ;;  %v351_v49 = vmul.bf16 %v287_v36, %v223_v29  ;;  %v272_v1 = vld [vmem:[%s2883_s2 + $0x9c] sm:$0xf]  ;;  %v194_v6 = vld [vmem:[%s2882_s1 + $0x64] sm:$0xf]  ;;  %v225_v16 = vld [vmem:[%s2882_s1 + $0xe0] sm:$0xf] }
  0x22   :  { %v1008_v48 = vadd.f32 %v1298_v38, %v1007_v40  ;;  %1433 = vmatpush3.bf16.msra.mxu0 %v1334_v41  ;;  %v352_v50 = vmul.bf16 %v288_v37, %v224_v33  ;;  %v2049_v51 = vadd.s32 72, %v1625_v4  ;;  %v2052_v54 = vadd.s32 32, %v1625_v4  ;;  %v258_v9 = vld [vmem:[%s2883_s2 + $0x64] sm:$0xf]  ;;  %v289_v20 = vld [vmem:[%s2883_s2 + $0xe0] sm:$0xf] }
  0x23   :  { %v1350_v52 = vcombine.low %v333_v44, %v334_v45  ;;  %v1343_v53 = vcombine.low %v319_v46, %v320_v47  ;;  %v303_v55 = vmul.bf16 %v2046_v43, %v2041_v42  ;;  %v226_v17 = vld [vmem:[%s2882_s1 + $0xe4] sm:$0xf]  ;;  %v177_v29 = vld [vmem:[%s2882_s1 + $0x20] sm:$0xf]  ;;  %v304_v34 = vmul.bf16 %v240_v59, %v176_v58  ;;  %v196_v59 = vld [vmem:[%s2882_s1 + $0x6c] sm:$0xf] }
  0x24   :  { %v1009_v56 = vadd.f32 %v1299_v39, %v1008_v48  ;;  %v1359_v57 = vcombine.low %v351_v49, %v352_v50  ;;  %vm2892_vm4 = vcmp.eq.s32.totalorder %v2049_v51, %v1697_v24  ;;  %vm2894_vm5 = vcmp.eq.s32.totalorder %v2049_v51, %v1699_v25  ;;  %v290_v21 = vld [vmem:[%s2883_s2 + $0xe4] sm:$0xf]  ;;  %v241_v38 = vld [vmem:[%s2883_s2 + $0x20] sm:$0xf] }
  0x25   :  { %1497 = vmatpush3.bf16.msra.mxu1 %v1350_v52  ;;  %1434 = vmatprep.subr.bf16.mxu0 %v1343_v53  ;;  %vm2893_vm10 = vcmp.eq.s32.totalorder %v2049_v51, %v1714_v30  ;;  %vm2895_vm12 = vcmp.eq.s32.totalorder %v2049_v51, %v1716_v31  ;;  %v1304_v2 = vsel %vm2892_vm4, 1.0, %v1593_v12  ;;  %v1305_v3 = vsel %vm2894_vm5, 1.0, %v1593_v12  ;;  %v178_v37 = vld [vmem:[%s2882_s1 + $0x24] sm:$0xf]  ;;  %v209_v44 = vld [vmem:[%s2882_s1 + $0xa0] sm:$0xf] }
  0x26   :  { %1010 = vadd.xlane.f32.xlu1 %v1009_v56  ;;  %1498 = vmatprep.subr.bf16.mxu1 %v1359_v57  ;;  %v1306_v10 = vsel %vm2893_vm10, 1.0, %v1593_v12  ;;  %v1307_v11 = vsel %vm2895_vm12, 1.0, %v1593_v12  ;;  %v1017_v15 = vadd.f32 %v1305_v3, %v1304_v2  ;;  %vm2898_vm4 = vcmp.eq.s32.totalorder %v2052_v54, %v1697_v24  ;;  %v242_v39 = vld [vmem:[%s2883_s2 + $0x24] sm:$0xf]  ;;  %v273_v45 = vld [vmem:[%s2883_s2 + $0xa0] sm:$0xf] }
  0x27   :  { %vm122_vm10 = vcmp.eq.s32.totalorder %v2052_v54, %v1699_v25  ;;  %vm2896_vm5 = vcmp.eq.s32.totalorder %v2052_v54, %v1714_v30  ;;  %vm2920_vm12 = vcmp.eq.s32.totalorder %v2052_v54, %v1716_v31  ;;  %v1284_v18 = vsel %vm2898_vm4, 1.0, %v1593_v12  ;;  %v210_v50 = vld [vmem:[%s2882_s1 + $0xa4] sm:$0xf]  ;;  %v195_v53 = vld [vmem:[%s2882_s1 + $0x68] sm:$0xf] }
  0x28   :  { %v1018_v22 = vadd.f32 %v1306_v10, %v1017_v15  ;;  %v1285_v23 = vsel %vm122_vm10, 1.0, %v1593_v12  ;;  %v1286_v26 = vsel %vm2896_vm5, 1.0, %v1593_v12  ;;  %v1287_v28 = vsel %vm2920_vm12, 1.0, %v1593_v12  ;;  %v274_v52 = vld [vmem:[%s2883_s2 + $0xa4] sm:$0xf]  ;;  %vm2481_vm12 = vmpackc.low %vm118_vm11, %vm114_vm2 }
  0x29   :  { %v992_v33 = vadd.f32 %v1285_v23, %v1284_v18  ;;  %v335_v35 = vmul.bf16 %v271_v0, %v207_v60  ;;  %v336_v36 = vmul.bf16 %v272_v1, %v208_v62  ;;  %v321_v41 = vmul.bf16 %v257_v8, %v193_v5  ;;  %v259_v60 = vld [vmem:[%s2883_s2 + $0x68] sm:$0xf]  ;;  %v260_v2 = vld [vmem:[%s2883_s2 + $0x6c] sm:$0xf]  ;;  %vm2500_vm2 = vmpackc.low %vm111_vm0, %vm107_vm8 }
  0x2a   :  { %v1019_v40 = vadd.f32 %v1307_v11, %v1018_v22  ;;  %v322_v42 = vmul.bf16 %v258_v9, %v194_v6  ;;  %v353_v43 = vmul.bf16 %v289_v20, %v225_v16  ;;  %v1335_v47 = vcombine.low %v303_v55, %v304_v34  ;;  %v227_v3 = vld [vmem:[%s2882_s1 + $0xe8] sm:$0xf]  ;;  %v228_v6 = vld [vmem:[%s2882_s1 + $0xec] sm:$0xf] }
  0x2b   :  { %v993_v46 = vadd.f32 %v1286_v26, %v992_v33  ;;  %v1351_v48 = vcombine.low %v335_v35, %v336_v36  ;;  %v354_v49 = vmul.bf16 %v290_v21, %v226_v17  ;;  %v2174_v57 = vadd.s32 88, %v1625_v4  ;;  %v291_v8 = vld [vmem:[%s2883_s2 + $0xe8] sm:$0xf]  ;;  %v292_v9 = vld [vmem:[%s2883_s2 + $0xec] sm:$0xf] }
  0x2c   :  { %1020 = vadd.xlane.f32.xlu1 %v1019_v40  ;;  %v1344_v56 = vcombine.low %v321_v41, %v322_v42  ;;  %v305_v55 = vmul.bf16 %v241_v38, %v177_v29  ;;  %v306_v58 = vmul.bf16 %v242_v39, %v178_v37  ;;  %1435 = vmatpush3.bf16.msra.mxu0 %v1335_v47  ;;  %v2189_v5 = vadd.s32 104, %v1625_v4  ;;  %v2227_v22 = vld [vmem:[%s2882_s1 + $0x28] sm:$0xf]  ;;  %v180_v23 = vld [vmem:[%s2882_s1 + $0x2c] sm:$0xf] }
  0x2d   :  { %v994_v62 = vadd.f32 %v1287_v28, %v993_v46  ;;  %1499 = vmatpush3.bf16.msra.mxu1 %v1351_v48  ;;  %v1360_v0 = vcombine.low %v353_v43, %v354_v49  ;;  %v337_v1 = vmul.bf16 %v273_v45, %v209_v44  ;;  %vm2901_vm5 = vcmp.eq.s32.totalorder %v2174_v57, %v1697_v24  ;;  %v243_v26 = vld [vmem:[%s2883_s2 + $0x28] sm:$0xf]  ;;  %v244_v28 = vld [vmem:[%s2883_s2 + $0x2c] sm:$0xf]  ;;  %v197_v41 = vld [vmem:[%s2882_s1 + $0x70] sm:$0xf] }
  0x2e   :  { %1436 = vmatprep.subr.bf16.mxu0 %v1344_v56  ;;  %vm2903_vm7 = vcmp.eq.s32.totalorder %v2174_v57, %v1699_v25  ;;  %vm2900_vm4 = vcmp.eq.s32.totalorder %v2174_v57, %v1714_v30  ;;  %vm2902_vm15 = vcmp.eq.s32.totalorder %v2174_v57, %v1716_v31  ;;  %v1312_v10 = vsel %vm2901_vm5, 1.0, %v1593_v12  ;;  %v211_v35 = vld [vmem:[%s2882_s1 + $0xa8] sm:$0xf]  ;;  %v212_v36 = vld [vmem:[%s2882_s1 + $0xac] sm:$0xf] }
  0x2f   :  { %995 = vadd.xlane.f32.xlu0 %v994_v62  ;;  %1500 = vmatprep.subr.bf16.mxu1 %v1360_v0  ;;  %v1313_v11 = vsel %vm2903_vm7, 1.0, %v1593_v12  ;;  %v1314_v15 = vsel %vm2900_vm4, 1.0, %v1593_v12  ;;  %v1315_v16 = vsel %vm2902_vm15, 1.0, %v1593_v12  ;;  %v1336_v18 = vcombine.low %v305_v55, %v306_v58  ;;  %v275_v37 = vld [vmem:[%s2883_s2 + $0xa8] sm:$0xf] }
  0x30   :  { %v1027_v17 = vadd.f32 %v1313_v11, %v1312_v10  ;;  %v338_v20 = vmul.bf16 %v274_v52, %v210_v50  ;;  %v323_v21 = vmul.bf16 %v259_v60, %v195_v53  ;;  %v324_v29 = vmul.bf16 %v260_v2, %v196_v59  ;;  %v276_v40 = vld [vmem:[%s2883_s2 + $0xac] sm:$0xf]  ;;  %v198_v42 = vld [vmem:[%s2882_s1 + $0x74] sm:$0xf]  ;;  %v261_v46 = vld [vmem:[%s2883_s2 + $0x70] sm:$0xf] }
  0x31   :  { %v355_v33 = vmul.bf16 %v291_v8, %v227_v3  ;;  %v356_v34 = vmul.bf16 %v292_v9, %v228_v6  ;;  %vm2905_vm4 = vcmp.eq.s32.totalorder %v2189_v5, %v1697_v24  ;;  %1437 = vmatpush3.bf16.msra.mxu0 %v1336_v18  ;;  %vm2907_vm5 = vcmp.eq.s32.totalorder %v2189_v5, %v1699_v25  ;;  %v262_v47 = vld [vmem:[%s2883_s2 + $0x74] sm:$0xf]  ;;  %v229_v59 = vld [vmem:[%s2882_s1 + $0xf0] sm:$0xf] }
  0x32   :  { %v1028_v38 = vadd.f32 %v1314_v15, %v1027_v17  ;;  %v1352_v39 = vcombine.low %v337_v1, %v338_v20  ;;  %vm2904_vm15 = vcmp.eq.s32.totalorder %v2189_v5, %v1714_v30  ;;  %v1345_v43 = vcombine.low %v323_v21, %v324_v29  ;;  %v230_v60 = vld [vmem:[%s2882_s1 + $0xf4] sm:$0xf]  ;;  %v293_v62 = vld [vmem:[%s2883_s2 + $0xf0] sm:$0xf] }
  0x33   :  { %v1361_v44 = vcombine.low %v355_v33, %v356_v34  ;;  %vm2906_vm7 = vcmp.eq.s32.totalorder %v2189_v5, %v1716_v31  ;;  %v1320_v45 = vsel %vm2905_vm4, 1.0, %v1593_v12  ;;  %v1321_v49 = vsel %vm2907_vm5, 1.0, %v1593_v12  ;;  %v294_v6 = vld [vmem:[%s2883_s2 + $0xf4] sm:$0xf]  ;;  %v181_v8 = vld [vmem:[%s2882_s1 + $0x30] sm:$0xf] }
  0x34   :  { %v1029_v48 = vadd.f32 %v1315_v16, %v1028_v38  ;;  %1501 = vmatpush3.bf16.msra.mxu1 %v1352_v39  ;;  %v1322_v50 = vsel %vm2904_vm15, 1.0, %v1593_v12  ;;  %v1323_v52 = vsel %vm2906_vm7, 1.0, %v1593_v12  ;;  %1438 = vmatprep.subr.bf16.mxu0 %v1345_v43  ;;  %v1037_v53 = vadd.f32 %v1321_v49, %v1320_v45  ;;  %v182_v9 = vld [vmem:[%s2882_s1 + $0x34] sm:$0xf]  ;;  %v245_v11 = vld [vmem:[%s2883_s2 + $0x30] sm:$0xf] }
  0x35   :  { %1502 = vmatprep.subr.bf16.mxu1 %v1361_v44  ;;  %v2287_v56 = vadd.s32 48, %v1625_v4  ;;  %v307_v55 = vmul.bf16 %v243_v26, %v2227_v22  ;;  %v308_v58 = vmul.bf16 %v244_v28, %v180_v23  ;;  %v339_v0 = vmul.bf16 %v275_v37, %v211_v35  ;;  %v246_v15 = vld [vmem:[%s2883_s2 + $0x34] sm:$0xf]  ;;  %v213_v16 = vld [vmem:[%s2882_s1 + $0xb0] sm:$0xf] }
  0x36   :  { %1030 = vadd.xlane.f32.xlu1 %v1029_v48  ;;  %v340_v1 = vmul.bf16 %v276_v40, %v212_v36  ;;  %v325_v2 = vmul.bf16 %v261_v46, %v197_v41  ;;  %v326_v3 = vmul.bf16 %v262_v47, %v198_v42  ;;  %v1038_v10 = vadd.f32 %v1322_v50, %v1037_v53  ;;  %v214_v21 = vld [vmem:[%s2882_s1 + $0xb4] sm:$0xf]  ;;  %v277_v29 = vld [vmem:[%s2883_s2 + $0xb0] sm:$0xf]  ;;  %v199_v42 = vld [vmem:[%s2882_s1 + $0x78] sm:$0xf] }
  0x37   :  { %vm2909_vm15 = vcmp.eq.s32.totalorder %v2287_v56, %v1697_v24  ;;  %vm2911_vm4 = vcmp.eq.s32.totalorder %v2287_v56, %v1699_v25  ;;  %vm2908_vm7 = vcmp.eq.s32.totalorder %v2287_v56, %v1714_v30  ;;  %vm2910_vm5 = vcmp.eq.s32.totalorder %v2287_v56, %v1716_v31  ;;  %v278_v33 = vld [vmem:[%s2883_s2 + $0xb4] sm:$0xf]  ;;  %v200_v43 = vld [vmem:[%s2882_s1 + $0x7c] sm:$0xf]  ;;  %v263_v44 = vld [vmem:[%s2883_s2 + $0x78] sm:$0xf] }
  0x38   :  { %v1292_v17 = vsel %vm2909_vm15, 1.0, %v1593_v12  ;;  %v1293_v18 = vsel %vm2911_vm4, 1.0, %v1593_v12  ;;  %v1294_v20 = vsel %vm2908_vm7, 1.0, %v1593_v12  ;;  %v1039_v22 = vadd.f32 %v1323_v52, %v1038_v10  ;;  %v264_v48 = vld [vmem:[%s2883_s2 + $0x7c] sm:$0xf] }
  0x39   :  { %v1295_v23 = vsel %vm2910_vm5, 1.0, %v1593_v12  ;;  %v1002_v26 = vadd.f32 %v1293_v18, %v1292_v17  ;;  %v1337_v28 = vcombine.low %v307_v55, %v308_v58  ;;  %v1353_v34 = vcombine.low %v339_v0, %v340_v1  ;;  %v231_v49 = vld [vmem:[%s2882_s1 + $0xf8] sm:$0xf]  ;;  %v232_v53 = vld [vmem:[%s2882_s1 + $0xfc] sm:$0xf] }
  0x3a   :  { %v1346_v35 = vcombine.low %v325_v2, %v326_v3  ;;  %v357_v36 = vmul.bf16 %v293_v62, %v229_v59  ;;  %v358_v37 = vmul.bf16 %v294_v6, %v230_v60  ;;  %1040 = vadd.xlane.f32.xlu1 %v1039_v22  ;;  %v2351_v39 = vadd.s32 120, %v1625_v4  ;;  %v295_v55 = vld [vmem:[%s2883_s2 + $0xf8] sm:$0xf]  ;;  %v296_v58 = vld [vmem:[%s2883_s2 + $0xfc] sm:$0xf] }
  0x3b   :  { %v1003_v38 = vadd.f32 %v1294_v20, %v1002_v26  ;;  %1439 = vmatpush3.bf16.msra.mxu0 %v1337_v28  ;;  %v309_v40 = vmul.bf16 %v245_v11, %v181_v8  ;;  %v310_v41 = vmul.bf16 %v246_v15, %v182_v9  ;;  %1503 = vmatpush3.bf16.msra.mxu1 %v1353_v34  ;;  %v2369_v50 = vadd.s32 64, %v1625_v4  ;;  %v183_v11 = vld [vmem:[%s2882_s1 + $0x38] sm:$0xf]  ;;  %v184_v15 = vld [vmem:[%s2882_s1 + $0x3c] sm:$0xf] }
  0x3c   :  { %1440 = vmatprep.subr.bf16.mxu0 %v1346_v35  ;;  %v1362_v45 = vcombine.low %v357_v36, %v358_v37  ;;  %v341_v46 = vmul.bf16 %v277_v29, %v213_v16  ;;  %v342_v47 = vmul.bf16 %v278_v33, %v214_v21  ;;  %vm2913_vm7 = vcmp.eq.s32.totalorder %v2351_v39, %v1697_v24  ;;  %v247_v16 = vld [vmem:[%s2883_s2 + $0x38] sm:$0xf]  ;;  %v248_v18 = vld [vmem:[%s2883_s2 + $0x3c] sm:$0xf] }
  0x3d   :  { %v1004_v52 = vadd.f32 %v1295_v23, %v1003_v38  ;;  %vm2915_vm15 = vcmp.eq.s32.totalorder %v2351_v39, %v1699_v25  ;;  %vm2912_vm5 = vcmp.eq.s32.totalorder %v2351_v39, %v1714_v30  ;;  %vm2914_vm4 = vcmp.eq.s32.totalorder %v2351_v39, %v1716_v31  ;;  %v215_v20 = vld [vmem:[%s2882_s1 + $0xb8] sm:$0xf]  ;;  %v216_v26 = vld [vmem:[%s2882_s1 + $0xbc] sm:$0xf] }
  0x3e   :  { %1504 = vmatprep.subr.bf16.mxu1 %v1362_v45  ;;  %v1328_v59 = vsel %vm2913_vm7, 1.0, %v1593_v12  ;;  %v1329_v60 = vsel %vm2915_vm15, 1.0, %v1593_v12  ;;  %v1330_v62 = vsel %vm2912_vm5, 1.0, %v1593_v12  ;;  %v1331_v0 = vsel %vm2914_vm4, 1.0, %v1593_v12  ;;  %v279_v28 = vld [vmem:[%s2883_s2 + $0xb8] sm:$0xf] }
  0x3f   :  { %1005 = vadd.xlane.f32.xlu0 %v1004_v52  ;;  %v1047_v1 = vadd.f32 %v1329_v60, %v1328_v59  ;;  %v1338_v2 = vcombine.low %v309_v40, %v310_v41  ;;  %v1354_v3 = vcombine.low %v341_v46, %v342_v47  ;;  %v327_v6 = vmul.bf16 %v263_v44, %v199_v42  ;;  %v280_v29 = vld [vmem:[%s2883_s2 + $0xbc] sm:$0xf] }
  0x40   :  { %v328_v8 = vmul.bf16 %v264_v48, %v200_v43  ;;  %v359_v9 = vmul.bf16 %v295_v55, %v231_v49  ;;  %v360_v10 = vmul.bf16 %v296_v58, %v232_v53  ;;  %vm2916_vm5 = vcmp.eq.s32.totalorder %v2369_v50, %v1697_v24 }
  0x41   :  { %v1048_v17 = vadd.f32 %v1330_v62, %v1047_v1  ;;  %1441 = vmatpush3.bf16.msra.mxu0 %v1338_v2  ;;  %1505 = vmatpush3.bf16.msra.mxu1 %v1354_v3  ;;  %vm2917_vm7 = vcmp.eq.s32.totalorder %v2369_v50, %v1699_v25  ;;  %v2424_v21 = vadd.s32 80, %v1625_v4  ;;  %vm2918_vm4 = vcmp.eq.s32.totalorder %v2369_v50, %v1714_v30 }
  0x42   :  { %v1347_v22 = vcombine.low %v327_v6, %v328_v8  ;;  %v1363_v23 = vcombine.low %v359_v9, %v360_v10  ;;  %vm2919_vm15 = vcmp.eq.s32.totalorder %v2369_v50, %v1716_v31  ;;  %v1300_v34 = vsel %vm2916_vm5, 1.0, %v1593_v12 }
  0x43   :  { %v1049_v33 = vadd.f32 %v1331_v0, %v1048_v17  ;;  %v1301_v35 = vsel %vm2917_vm7, 1.0, %v1593_v12  ;;  %v1302_v36 = vsel %vm2918_vm4, 1.0, %v1593_v12  ;;  %v1303_v37 = vsel %vm2919_vm15, 1.0, %v1593_v12 }
  0x44   :  { %1442 = vmatprep.subr.bf16.mxu0 %v1347_v22  ;;  %1506 = vmatprep.subr.bf16.mxu1 %v1363_v23  ;;  %v1012_v38 = vadd.f32 %v1301_v35, %v1300_v34  ;;  %v311_v40 = vmul.bf16 %v247_v16, %v183_v11  ;;  %v312_v41 = vmul.bf16 %v248_v18, %v184_v15  ;;  %v2492_v58 = vadd.s32 96, %v1625_v4  ;;  %v965_v35 = vld [vmem:[#allocation3 + $0x48] sm:$0xff] }
  0x45   :  { %1050 = vadd.xlane.f32.xlu1 %v1049_v33  ;;  %v343_v42 = vmul.bf16 %v279_v28, %v215_v20  ;;  %v344_v43 = vmul.bf16 %v280_v29, %v216_v26  ;;  %vm2921_vm5 = vcmp.eq.s32.totalorder %v2424_v21, %v1697_v24  ;;  %vm146_vm7 = vcmp.eq.s32.totalorder %v2424_v21, %v1699_v25 }
  0x46   :  { %v1013_v44 = vadd.f32 %v1302_v36, %v1012_v38  ;;  %v1339_v45 = vcombine.low %v311_v40, %v312_v41  ;;  %vm2922_vm4 = vcmp.eq.s32.totalorder %v2424_v21, %v1714_v30  ;;  %vm148_vm15 = vcmp.eq.s32.totalorder %v2424_v21, %v1716_v31  ;;  %v960_v40 = vld [vmem:[#allocation3 + $0x20] sm:$0xff] }
  0x47   :  { %v1355_v46 = vcombine.low %v343_v42, %v344_v43  ;;  %v1308_v47 = vsel %vm2921_vm5, 1.0, %v1593_v12  ;;  %v1309_v48 = vsel %vm146_vm7, 1.0, %v1593_v12  ;;  %v1310_v49 = vsel %vm2922_vm4, 1.0, %v1593_v12  ;;  %vm1366_vm5 = vmpackc.low %vm109_vm13, %vm105_vm3  ;;  %v967_v43 = vld [vmem:[#allocation3 + $0x58] sm:$0xff] }
  0x48   :  { %v1014_v53 = vadd.f32 %v1303_v37, %v1013_v44  ;;  %1443 = vmatpush3.bf16.msra.mxu0 %v1339_v45  ;;  %v1022_v55 = vadd.f32 %v1309_v48, %v1308_v47  ;;  %v1311_v60 = vsel %vm148_vm15, 1.0, %v1593_v12  ;;  %v2509_v62 = vadd.s32 112, %v1625_v4  ;;  %v969_v48 = vld [vmem:[#allocation3 + $0x68] sm:$0xff] }
  0x49   :  { %1507 = vmatpush3.bf16.msra.mxu1 %v1355_v46  ;;  %vm2935_vm3 = vcmp.eq.s32.totalorder %v1678_v14, %v1716_v31  ;;  %vm153_vm0 = vcmp.eq.s32.totalorder %v2492_v58, %v1697_v24  ;;  %vm154_vm8 = vcmp.eq.s32.totalorder %v2492_v58, %v1699_v25  ;;  %vm155_vm13 = vcmp.eq.s32.totalorder %v2492_v58, %v1714_v30 }
  0x4a   :  { %vm2517_vm11 = vmpackc.low %vm2935_vm3, %vm116_vm6  ;;  %1015 = vadd.xlane.f32.xlu0 %v1014_v53  ;;  %v1023_v0 = vadd.f32 %v1310_v49, %v1022_v55  ;;  %vm156_vm4 = vcmp.eq.s32.totalorder %v2492_v58, %v1716_v31  ;;  %v1316_v4 = vsel %vm153_vm0, 1.0, %v1593_v12  ;;  %v1317_v13 = vsel %vm154_vm8, 1.0, %v1593_v12 }
  0x4b   :  { %1367 = vmatmul.mubr.msk.bf16.vlgmr.msra.gmra.mrb[0].mxu0 %vm1366_vm5, %v1594_v19  ;;  %v1318_v14 = vsel %vm155_vm13, 1.0, %v1593_v12  ;;  %v1595_v1 = vmov 0   ;;  %v1319_v3 = vsel %vm156_vm4, 1.0, %v1593_v12  ;;  %v1032_v6 = vadd.f32 %v1317_v13, %v1316_v4  ;;  %v971_v13 = vld [vmem:[#allocation3 + $0x78] sm:$0xff] }
  0x4c   :  { %1559 = vset.pattern.permute.xlu0 %v1595_v1  ;;  %1399 = vmatmul.mubr.msk.bf16.vlgmr.msra.gmra.mrb[0].mxu1 %vm2500_vm2, %v1594_v19  ;;  %v1024_v2 = vadd.f32 %v1311_v60, %v1023_v0  ;;  %vm2924_vm6 = vcmp.eq.s32.totalorder %v2509_v62, %v1697_v24  ;;  %vm2926_vm5 = vcmp.eq.s32.totalorder %v2509_v62, %v1699_v25  ;;  %v962_v60 = vld [vmem:[#allocation3 + $0x30] sm:$0xff] }
  0x4d   :  { %1369 = vmatprep.mubr.msk.bf16.mxu0 %vm2481_vm12, %v1594_v19  ;;  %1401 = vmatprep.mubr.msk.bf16.mxu1 %vm2517_vm11, %v1594_v19  ;;  %vm2923_vm2 = vcmp.eq.s32.totalorder %v2509_v62, %v1714_v30  ;;  %vm2925_vm3 = vcmp.eq.s32.totalorder %v2509_v62, %v1716_v31  ;;  %v1324_v8 = vsel %vm2924_vm6, 1.0, %v1593_v12  ;;  %v1033_v9 = vadd.f32 %v1318_v14, %v1032_v6  ;;  %vm1372_vm12 = vmpackc.low %vm126_vm9, %vm122_vm10  ;;  %v964_v6 = vld [vmem:[#allocation3 + $0x40] sm:$0xff] }
  0x4e   :  { %1560 = vset.pattern.permute.xlu1 %v1595_v1  ;;  %1025 = vadd.xlane.f32.xlu0 %v1024_v2  ;;  %v1325_v10 = vsel %vm2926_vm5, 1.0, %v1593_v12  ;;  %v1326_v11 = vsel %vm2923_vm2, 1.0, %v1593_v12  ;;  %v1327_v17 = vsel %vm2925_vm3, 1.0, %v1593_v12  ;;  %vm2938_vm11 = vcmp.eq.s32.totalorder %v2052_v54, %v1716_v31 }
  0x4f   :  { %v1042_v15 = vadd.f32 %v1325_v10, %v1324_v8  ;;  %v1034_v16 = vadd.f32 %v1319_v3, %v1033_v9  ;;  %vm2939_vm2 = vcmp.eq.s32.totalorder %v1890_v32, %v1716_v31  ;;  %vm2940_vm9 = vcmp.eq.s32.totalorder %v2052_v54, %v1697_v24 }
  0x50   :  { %vm1404_vm6 = vmpackc.low %vm2939_vm2, %vm2938_vm11  ;;  %vm2941_vm10 = vcmp.eq.s32.totalorder %v1890_v32, %v1697_v24  ;;  %vm2943_vm11 = vcmp.eq.s32.totalorder %v1890_v32, %v1714_v30  ;;  %vm2946_vm5 = vcmp.eq.s32.totalorder %v2287_v56, %v1716_v31 }
  0x51   :  { %v1043_v18 = vadd.f32 %v1326_v11, %v1042_v15  ;;  %vm1374_vm2 = vmpackc.low %vm2941_vm10, %vm2940_vm9  ;;  %vm2947_vm9 = vcmp.eq.s32.totalorder %v1976_v7, %v1716_v31 }
  0x52   :  { %1035 = vadd.xlane.f32.xlu0 %v1034_v16  ;;  %vm1408_vm10 = vmpackc.low %vm2947_vm9, %vm2946_vm5  ;;  %vm2951_vm5 = vcmp.eq.s32.totalorder %v1976_v7, %v1714_v30  ;;  %v966_v16 = vld [vmem:[#allocation3 + $0x50] sm:$0xff] }
  0x53   :  { %1371 = vmatmul.mubr.msk.bf16.gmra.mrb[4].mxu0 %vm1832_vm14, %v1594_v19  ;;  %v1044_v20 = vadd.f32 %v1327_v17, %v1043_v18  ;;  %vm2942_vm14 = vcmp.eq.s32.totalorder %v2052_v54, %v1714_v30 }
  0x54   :  { %1403 = vmatmul.mubr.msk.bf16.gmra.mrb[4].mxu1 %vm1971_vm1, %v1594_v19  ;;  %1373 = vmatprep.mubr.msk.bf16.mxu0 %vm1372_vm12, %v1594_v19  ;;  %vm1406_vm3 = vmpackc.low %vm2943_vm11, %vm2942_vm14  ;;  %vm2944_vm1 = vcmp.eq.s32.totalorder %v2287_v56, %v1699_v25  ;;  %vm2948_vm14 = vcmp.eq.s32.totalorder %v2287_v56, %v1697_v24  ;;  %vm2949_vm11 = vcmp.eq.s32.totalorder %v1976_v7, %v1697_v24 }
  0x55   :  { %1405 = vmatprep.mubr.msk.bf16.mxu1 %vm1404_vm6, %v1594_v19  ;;  %vm2945_vm6 = vcmp.eq.s32.totalorder %v1976_v7, %v1699_v25 }
  0x56   :  { %1045 = vadd.xlane.f32.xlu0 %v1044_v20  ;;  %vm1376_vm12 = vmpackc.low %vm2945_vm6, %vm2944_vm1  ;;  %vm2950_vm6 = vcmp.eq.s32.totalorder %v2287_v56, %v1714_v30 }
  0x57   :  { %vm1378_vm1 = vmpackc.low %vm2949_vm11, %vm2948_vm14  ;;  %vm2955_vm14 = vcmp.eq.s32.totalorder %v2049_v51, %v1716_v31 }
  0x5b   :  { %1375 = vmatmul.mubr.msk.bf16.gmra.mrb[8].mxu0 %vm1374_vm2, %v1594_v19  ;;  %vm1410_vm2 = vmpackc.low %vm2951_vm5, %vm2950_vm6  ;;  %vm2956_vm6 = vcmp.eq.s32.totalorder %v2369_v50, %v1697_v24  ;;  %vm2957_vm5 = vcmp.eq.s32.totalorder %v2049_v51, %v1697_v24 }
  0x5c   :  { %1407 = vmatmul.mubr.msk.bf16.gmra.mrb[8].mxu1 %vm1406_vm3, %v1594_v19  ;;  %1377 = vmatprep.mubr.msk.bf16.mxu0 %vm1376_vm12, %v1594_v19  ;;  %vm2952_vm3 = vcmp.eq.s32.totalorder %v2369_v50, %v1699_v25  ;;  %vm2953_vm12 = vcmp.eq.s32.totalorder %v2049_v51, %v1699_v25 }
  0x5d   :  { %1409 = vmatprep.mubr.msk.bf16.mxu1 %vm1408_vm10, %v1594_v19  ;;  %vm1380_vm9 = vmpackc.low %vm2953_vm12, %vm2952_vm3  ;;  %vm2954_vm10 = vcmp.eq.s32.totalorder %v2369_v50, %v1716_v31  ;;  %vm2958_vm12 = vcmp.eq.s32.totalorder %v2369_v50, %v1714_v30 }
  0x5e   :  { %vm1412_vm11 = vmpackc.low %vm2955_vm14, %vm2954_vm10  ;;  %vm2959_vm10 = vcmp.eq.s32.totalorder %v2049_v51, %v1714_v30  ;;  %vm2961_vm14 = vcmp.eq.s32.totalorder %v2174_v57, %v1716_v31  ;;  %v957_v51 = vld [vmem:[#allocation3 + $0x8] sm:$0xff] }
  0x5f   :  { %vm1382_vm3 = vmpackc.low %vm2957_vm5, %vm2956_vm6  ;;  %vm2962_vm6 = vcmp.eq.s32.totalorder %v2424_v21, %v1697_v24 }
  0x63   :  { %1379 = vmatmul.mubr.msk.bf16.gmra.mrb[12].mxu0 %vm1378_vm1, %v1594_v19  ;;  %vm1414_vm1 = vmpackc.low %vm2959_vm10, %vm2958_vm12  ;;  %vm2964_vm12 = vcmp.eq.s32.totalorder %v2424_v21, %v1714_v30  ;;  %vm2966_vm10 = vcmp.eq.s32.totalorder %v2189_v5, %v1699_v25  ;;  %v963_v21 = vld [vmem:[#allocation3 + $0x38] sm:$0xff] }
  0x64   :  { %1411 = vmatmul.mubr.msk.bf16.gmra.mrb[12].mxu1 %vm1410_vm2, %v1594_v19  ;;  %1381 = vmatprep.mubr.msk.bf16.mxu0 %vm1380_vm9, %v1594_v19  ;;  %vm2960_vm2 = vcmp.eq.s32.totalorder %v2174_v57, %v1699_v25 }
  0x65   :  { %1413 = vmatprep.mubr.msk.bf16.mxu1 %vm1412_vm11, %v1594_v19  ;;  %vm1384_vm9 = vmpackc.low %vm2960_vm2, %vm146_vm7  ;;  %vm2963_vm7 = vcmp.eq.s32.totalorder %v2174_v57, %v1697_v24  ;;  %vm2967_vm2 = vcmp.eq.s32.totalorder %v2189_v5, %v1716_v31 }
  0x66   :  { %vm1416_vm11 = vmpackc.low %vm2961_vm14, %vm148_vm15  ;;  %vm2965_vm15 = vcmp.eq.s32.totalorder %v2174_v57, %v1714_v30 }
  0x67   :  { %vm1386_vm5 = vmpackc.low %vm2963_vm7, %vm2962_vm6  ;;  %vm2970_vm6 = vcmp.eq.s32.totalorder %v2509_v62, %v1699_v25  ;;  %vm2971_vm7 = vcmp.eq.s32.totalorder %v2351_v39, %v1699_v25  ;;  %v958_v25 = vld [vmem:[#allocation3 + $0x10] sm:$0xff] }
  0x6b   :  { %1383 = vmatmul.mubr.msk.bf16.gmra.mrb[16].mxu0 %vm1382_vm3, %v1594_v19  ;;  %vm1418_vm3 = vmpackc.low %vm2965_vm15, %vm2964_vm12  ;;  %vm2972_vm12 = vcmp.eq.s32.totalorder %v2509_v62, %v1716_v31 }
  0x6c   :  { %1415 = vmatmul.mubr.msk.bf16.gmra.mrb[16].mxu1 %vm1414_vm1, %v1594_v19  ;;  %1385 = vmatprep.mubr.msk.bf16.mxu0 %vm1384_vm9, %v1594_v19  ;;  %vm1388_vm1 = vmpackc.low %vm2966_vm10, %vm154_vm8  ;;  %vm2968_vm8 = vcmp.eq.s32.totalorder %v2189_v5, %v1697_v24 }
  0x6d   :  { %1417 = vmatprep.mubr.msk.bf16.mxu1 %vm1416_vm11, %v1594_v19  ;;  %vm1420_vm9 = vmpackc.low %vm2967_vm2, %vm156_vm4  ;;  %vm2969_vm4 = vcmp.eq.s32.totalorder %v2189_v5, %v1714_v30  ;;  %vm2977_vm2 = vcmp.eq.s32.totalorder %v2351_v39, %v1714_v30  ;;  %v961_v5 = vld [vmem:[#allocation3 + $0x28] sm:$0xff] }
  0x6e   :  { %vm1390_vm14 = vmpackc.low %vm2968_vm8, %vm153_vm0  ;;  %vm2973_vm0 = vcmp.eq.s32.totalorder %v2351_v39, %v1716_v31  ;;  %v956_v31 = vld [vmem:[#allocation3] sm:$0xff]  ;;  %vm19_vm8 = vcmask 523264  }
  0x6f   :  { %vm1422_vm11 = vmpackc.low %vm2969_vm4, %vm155_vm13  ;;  %vm2974_vm13 = vcmp.eq.s32.totalorder %v2509_v62, %v1697_v24  ;;  %20 = vst.msk [vmem:[#allocation2] sm:$0xff] %vm19_vm8, %v1593_v12 }
  0x70   :  { %vm1424_vm15 = vmpackc.low %vm2973_vm0, %vm2972_vm12  ;;  %21 = vst.msk [vmem:[#allocation2 + $0x8] sm:$0xff] %vm19_vm8, %v1593_v12 }
  0x71   :  { %22 = vst.msk [vmem:[#allocation2 + $0x10] sm:$0xff] %vm19_vm8, %v1593_v12  ;;  %23 = vst.msk [vmem:[#allocation2 + $0x18] sm:$0xff] %vm19_vm8, %v1593_v12 }
  0x72   :  { %24 = vst.msk [vmem:[#allocation2 + $0x20] sm:$0xff] %vm19_vm8, %v1593_v12  ;;  %25 = vst.msk [vmem:[#allocation2 + $0x28] sm:$0xff] %vm19_vm8, %v1593_v12 }
  0x73   :  { %1387 = vmatmul.mubr.msk.bf16.gmra.mrb[20].mxu0 %vm1386_vm5, %v1594_v19  ;;  %vm1392_vm5 = vmpackc.low %vm2971_vm7, %vm2970_vm6  ;;  %26 = vst.msk [vmem:[#allocation2 + $0x30] sm:$0xff] %vm19_vm8, %v1593_v12 }
  0x74   :  { %1419 = vmatmul.mubr.msk.bf16.gmra.mrb[20].mxu1 %vm1418_vm3, %v1594_v19  ;;  %1389 = vmatprep.mubr.msk.bf16.mxu0 %vm1388_vm1, %v1594_v19  ;;  %vm2975_vm3 = vcmp.eq.s32.totalorder %v2351_v39, %v1697_v24  ;;  %vm2976_vm1 = vcmp.eq.s32.totalorder %v2509_v62, %v1714_v30  ;;  %27 = vst.msk [vmem:[#allocation2 + $0x38] sm:$0xff] %vm19_vm8, %v1593_v12  ;;  %28 = vst.msk [vmem:[#allocation2 + $0x40] sm:$0xff] %vm19_vm8, %v1593_v12  ;;  %v959_v30 = vld [vmem:[#allocation3 + $0x18] sm:$0xff] }
  0x75   :  { %1421 = vmatprep.mubr.msk.bf16.mxu1 %vm1420_vm9, %v1594_v19  ;;  %vm1394_vm10 = vmpackc.low %vm2975_vm3, %vm2974_vm13  ;;  %29 = vst.msk [vmem:[#allocation2 + $0x48] sm:$0xff] %vm19_vm8, %v1593_v12 }
  0x76   :  { %vm1426_vm9 = vmpackc.low %vm2977_vm2, %vm2976_vm1  ;;  %30 = vst.msk [vmem:[#allocation2 + $0x50] sm:$0xff] %vm19_vm8, %v1593_v12 }
  0x77   :  { %31 = vst.msk [vmem:[#allocation2 + $0x58] sm:$0xff] %vm19_vm8, %v1593_v12  ;;  %32 = vst.msk [vmem:[#allocation2 + $0x60] sm:$0xff] %vm19_vm8, %v1593_v12 }
  0x78   :  { %33 = vst.msk [vmem:[#allocation2 + $0x68] sm:$0xff] %vm19_vm8, %v1593_v12  ;;  %34 = vst.msk [vmem:[#allocation2 + $0x70] sm:$0xff] %vm19_vm8, %v1593_v12 }
  0x79   :  { %35 = vst.msk [vmem:[#allocation2 + $0x78] sm:$0xff] %vm19_vm8, %v1593_v12 }
  0x7b   :  { %1391 = vmatmul.mubr.msk.bf16.gmra.mrb[24].mxu0 %vm1390_vm14, %v1594_v19  ;;  %vm2978_vm14 = vcmask 7168  }
  0x7c   :  { %1423 = vmatmul.mubr.msk.bf16.gmra.mrb[24].mxu1 %vm1422_vm11, %v1594_v19  ;;  %1393 = vmatprep.mubr.msk.bf16.mxu0 %vm1392_vm5, %v1594_v19  ;;  %vm2979_vm4 = vmmov %vm2978_vm14 }
  0x7d   :  { %1425 = vmatprep.mubr.msk.bf16.mxu1 %vm1424_vm15, %v1594_v19  ;;  %vm2980_vm11 = vmmov %vm2979_vm4 }
  0x7e   :  { %vm2981_vm6 = vmmov %vm2979_vm4 }
  0x7f   :  { %vm2982_vm7 = vmmov %vm2979_vm4 }
  0x80   :  { %vm2983_vm5 = vmmov %vm2979_vm4 }
  0x81   :  { %vm2984_vm12 = vmmov %vm2979_vm4 }
  0x82   :  { %vm2985_vm0 = vmmov %vm2979_vm4 }
  0x83   :  { %1395 = vmatmul.mubr.msk.bf16.gmra.mrb[28].mxu0 %vm1394_vm10, %v1594_v19  ;;  %vm2986_vm15 = vmmov %vm2985_vm0 }
  0x84   :  { %1427 = vmatmul.mubr.msk.bf16.gmra.mrb[28].mxu1 %vm1426_vm9, %v1594_v19  ;;  %vm2987_vm13 = vmmov %vm2985_vm0 }
  0x85   :  { %vm2988_vm3 = vmmov %vm2985_vm0 }
  0x86   :  { %vm2989_vm10 = vmmov %vm2985_vm0 }
  0x87   :  { %vm2990_vm1 = vmmov %vm2985_vm0 }
  0x88   :  { %vm2991_vm2 = vmmov %vm2985_vm0 }
  0x89   :  { %vm2992_vm9 = vmmov %vm2985_vm0 }
  0x9f   :  { %v986_v63 = vpop.xlane.xlu1 %985 }
  0xa0   :  { %v1054_v32 = vadd.f32 %v986_v63, %v958_v25 }
  0xa1   :  { %v976_v61 = vpop.xlane.xlu0 %975 }
  0xa2   :  { %v1052_v24 = vadd.f32 %v976_v61, %v956_v31  ;;  %1071 = vst.msk [vmem:[#allocation3 + $0x10] sm:$0xff] %vm2978_vm14, %v1054_v32  ;;  %v968_v31 = vld [vmem:[#allocation3 + $0x60] sm:$0xff]  ;;  %vm2993_vm14 = vmmov %vm2985_vm0 }
  0xa4   :  { %1069 = vst.msk [vmem:[#allocation3] sm:$0xff] %vm2979_vm4, %v1052_v24  ;;  %v991_v19 = vpop.xlane.xlu1 %990  ;;  %v970_v24 = vld [vmem:[#allocation3 + $0x70] sm:$0xff] }
  0xa5   :  { %v1055_v7 = vadd.f32 %v991_v19, %v959_v30 }
  0xa7   :  { %1072 = vst.msk [vmem:[#allocation3 + $0x18] sm:$0xff] %vm2980_vm11, %v1055_v7  ;;  %v981_v54 = vpop.xlane.xlu0 %980 }
  0xa8   :  { %v1053_v57 = vadd.f32 %v981_v54, %v957_v51 }
  0xa9   :  { %v1106_v23 = vld [vmem:[#allocation3 + $0x10] sm:$0xff] }
  0xaa   :  { %1070 = vst.msk [vmem:[#allocation3 + $0x8] sm:$0xff] %vm2981_vm6, %v1053_v57  ;;  %v1122_v33 = vmax.f32 %v1106_v23, 1.0 }
  0xab   :  { %v1104_v56 = vld [vmem:[#allocation3] sm:$0xff] }
  0xac   :  { %v1120_v39 = vmax.f32 %v1104_v56, 1.0 }
  0xad   :  { %v1001_v50 = vpop.xlane.xlu1 %1000 }
  0xae   :  { %v1057_v12 = vadd.f32 %v1001_v50, %v961_v5  ;;  %1138 = vperm.xlu0 %1559, %v1120_v39   ;;  %v1107_v34 = vld [vmem:[#allocation3 + $0x18] sm:$0xff] }
  0xaf   :  { %v1123_v36 = vmax.f32 %v1107_v34, 1.0 }
  0xb0   :  { %1074 = vst.msk [vmem:[#allocation3 + $0x28] sm:$0xff] %vm2982_vm7, %v1057_v12 }
  0xb1   :  { %v1105_v22 = vld [vmem:[#allocation3 + $0x8] sm:$0xff] }
  0xb2   :  { %v1121_v26 = vmax.f32 %v1105_v22, 1.0 }
  0xb3   :  { %v1011_v28 = vpop.xlane.xlu1 %1010 }
  0xb4   :  { %v1059_v29 = vadd.f32 %v1011_v28, %v963_v21  ;;  %1143 = vperm.xlu1 %1560, %v1121_v26  }
  0xb6   :  { %1076 = vst.msk [vmem:[#allocation3 + $0x38] sm:$0xff] %vm2983_vm5, %v1059_v29 }
  0xb7   :  { %v1109_v52 = vld [vmem:[#allocation3 + $0x28] sm:$0xff] }
  0xb8   :  { %1148 = vperm.xlu1 %1560, %v1122_v33   ;;  %v1125_v59 = vmax.f32 %v1109_v52, 1.0 }
  0xb9   :  { %v1021_v37 = vpop.xlane.xlu1 %1020 }
  0xba   :  { %v1061_v38 = vadd.f32 %v1021_v37, %v965_v35  ;;  %v361_v35 = vld [vmem:[#allocation2] sm:$0xff] }
  0xbc   :  { %1078 = vst.msk [vmem:[#allocation3 + $0x48] sm:$0xff] %vm2984_vm12, %v1061_v38  ;;  %v996_v41 = vpop.xlane.xlu0 %995  ;;  %1153 = vperm.xlu1 %1560, %v1123_v36  }
  0xbd   :  { %v1056_v42 = vadd.f32 %v996_v41, %v960_v40  ;;  %v1111_v9 = vld [vmem:[#allocation3 + $0x38] sm:$0xff]  ;;  %v362_v41 = vld [vmem:[#allocation2 + $0x8] sm:$0xff] }
  0xbe   :  { %v1127_v17 = vmax.f32 %v1111_v9, 1.0 }
  0xbf   :  { %1073 = vst.msk [vmem:[#allocation3 + $0x20] sm:$0xff] %vm2985_vm0, %v1056_v42 }
  0xc3   :  { %v1031_v44 = vpop.xlane.xlu1 %1030  ;;  %v1113_v45 = vld [vmem:[#allocation3 + $0x48] sm:$0xff] }
  0xc4   :  { %v1063_v46 = vadd.f32 %v1031_v44, %v967_v43  ;;  %v1129_v47 = vmax.f32 %v1113_v45, 1.0 }
  0xc6   :  { %1080 = vst.msk [vmem:[#allocation3 + $0x58] sm:$0xff] %vm2986_vm15, %v1063_v46  ;;  %1183 = vperm.xlu0 %1559, %v1129_v47   ;;  %v1108_v49 = vld [vmem:[#allocation3 + $0x20] sm:$0xff] }
  0xc7   :  { %v1124_v53 = vmax.f32 %v1108_v49, 1.0  ;;  %v1041_v55 = vpop.xlane.xlu1 %1040 }
  0xc8   :  { %v1065_v58 = vadd.f32 %v1041_v55, %v969_v48 }
  0xc9   :  { %1158 = vperm.xlu1 %1560, %v1124_v53  }
  0xca   :  { %1082 = vst.msk [vmem:[#allocation3 + $0x68] sm:$0xff] %vm2987_vm13, %v1065_v58 }
  0xcc   :  { %v1006_v62 = vpop.xlane.xlu0 %1005 }
  0xcd   :  { %v1058_v27 = vadd.f32 %v1006_v62, %v962_v60  ;;  %v1115_v0 = vld [vmem:[#allocation3 + $0x58] sm:$0xff]  ;;  %1163 = vperm.xlu1 %1560, %v1125_v59   ;;  %v363_v59 = vld [vmem:[#allocation2 + $0x10] sm:$0xff] }
  0xce   :  { %v1131_v4 = vmax.f32 %v1115_v0, 1.0 }
  0xcf   :  { %1075 = vst.msk [vmem:[#allocation3 + $0x30] sm:$0xff] %vm2988_vm3, %v1058_v27 }
  0xd0   :  { %1193 = vperm.xlu0 %1559, %v1131_v4   ;;  %v364_v4 = vld [vmem:[#allocation2 + $0x18] sm:$0xff] }
  0xd1   :  { %v1117_v1 = vld [vmem:[#allocation3 + $0x68] sm:$0xff] }
  0xd2   :  { %v1051_v14 = vpop.xlane.xlu1 %1050  ;;  %v1133_v3 = vmax.f32 %v1117_v1, 1.0 }
  0xd3   :  { %v1067_v2 = vadd.f32 %v1051_v14, %v971_v13 }
  0xd4   :  { %1203 = vperm.xlu0 %1559, %v1133_v3  }
  0xd5   :  { %1084 = vst.msk [vmem:[#allocation3 + $0x78] sm:$0xff] %vm2989_vm10, %v1067_v2 }
  0xd6   :  { %v1110_v8 = vld [vmem:[#allocation3 + $0x30] sm:$0xff] }
  0xd7   :  { %v1016_v10 = vpop.xlane.xlu0 %1015  ;;  %v1126_v11 = vmax.f32 %v1110_v8, 1.0 }
  0xd8   :  { %v1060_v15 = vadd.f32 %v1016_v10, %v964_v6 }
  0xd9   :  { %1168 = vperm.xlu1 %1560, %v1126_v11  }
  0xda   :  { %1077 = vst.msk [vmem:[#allocation3 + $0x40] sm:$0xff] %vm2990_vm1, %v1060_v15 }
  0xdb   :  { %v1026_v18 = vpop.xlane.xlu0 %1025 }
  0xdc   :  { %v1062_v20 = vadd.f32 %v1026_v18, %v966_v16  ;;  %v1119_v25 = vld [vmem:[#allocation3 + $0x78] sm:$0xff]  ;;  %v365_v18 = vld [vmem:[#allocation2 + $0x20] sm:$0xff] }
  0xdd   :  { %v1135_v63 = vmax.f32 %v1119_v25, 1.0  ;;  %1173 = vperm.xlu1 %1560, %v1127_v17  }
  0xde   :  { %1079 = vst.msk [vmem:[#allocation3 + $0x50] sm:$0xff] %vm2991_vm2, %v1062_v20 }
  0xdf   :  { %v1036_v32 = vpop.xlane.xlu0 %1035  ;;  %1213 = vperm.xlu0 %1559, %v1135_v63  }
  0xe0   :  { %v1064_v61 = vadd.f32 %v1036_v32, %v968_v31 }
  0xe1   :  { %v1112_v30 = vld [vmem:[#allocation3 + $0x40] sm:$0xff] }
  0xe2   :  { %1081 = vst.msk [vmem:[#allocation3 + $0x60] sm:$0xff] %vm2992_vm9, %v1064_v61  ;;  %v1128_v19 = vmax.f32 %v1112_v30, 1.0  ;;  %v366_v61 = vld [vmem:[#allocation2 + $0x28] sm:$0xff] }
  0xe3   :  { %v1046_v7 = vpop.xlane.xlu0 %1045 }
  0xe4   :  { %v1066_v51 = vadd.f32 %v1046_v7, %v970_v24  ;;  %1178 = vperm.xlu1 %1560, %v1128_v19  }
  0xe5   :  { %v1114_v54 = vld [vmem:[#allocation3 + $0x50] sm:$0xff] }
  0xe6   :  { %1083 = vst.msk [vmem:[#allocation3 + $0x70] sm:$0xff] %vm2993_vm14, %v1066_v51  ;;  %v1130_v57 = vmax.f32 %v1114_v54, 1.0 }
  0xe8   :  { %1188 = vperm.xlu1 %1560, %v1130_v57  }
  0xe9   :  { %v1116_v5 = vld [vmem:[#allocation3 + $0x60] sm:$0xff] }
  0xea   :  { %v1132_v56 = vmax.f32 %v1116_v5, 1.0 }
  0xec   :  { %1198 = vperm.xlu1 %1560, %v1132_v56  }
  0xed   :  { %v1118_v39 = vld [vmem:[#allocation3 + $0x70] sm:$0xff] }
  0xee   :  { %v1134_v50 = vmax.f32 %v1118_v39, 1.0 }
  0xf0   :  { %1208 = vperm.xlu1 %1560, %v1134_v50  }
 0x11e   :  { %v1444_v12 = vpop.f32.mrb[0].mxu0 }
 0x11f   :  { %v1508_v21 = vpop.f32.mrb[0].mxu1  ;;  %v1445_v22 = vpop.f32.mrb[1].mxu0 }
 0x120   :  { %v1446_v23 = vadd.f32 %v1445_v22, %v1444_v12  ;;  %v1509_v26 = vpop.f32.mrb[1].mxu1  ;;  %v1447_v28 = vpop.f32.mrb[2].mxu0 }
 0x121   :  { %v1510_v29 = vadd.f32 %v1509_v26, %v1508_v21  ;;  %v1511_v33 = vpop.f32.mrb[2].mxu1  ;;  %v1448_v34 = vpop.f32.mrb[3].mxu0  ;;  %v367_v26 = vld [vmem:[#allocation2 + $0x30] sm:$0xff] }
 0x122   :  { %v1449_v36 = vadd.f32 %v1448_v34, %v1447_v28  ;;  %v1512_v37 = vpop.f32.mrb[3].mxu1 }
 0x123   :  { %v861_v38 = vadd.f32 %v1510_v29, %v1446_v23  ;;  %v1513_v40 = vadd.f32 %v1512_v37, %v1511_v33 }
 0x125   :  { %v923_v42 = vadd.f32 %v861_v38, %v361_v35  ;;  %v864_v43 = vadd.f32 %v1513_v40, %v1449_v36  ;;  %v368_v36 = vld [vmem:[#allocation2 + $0x38] sm:$0xff] }
 0x126   :  { %v1450_v44 = vpop.f32.mrb[4].mxu0 }
 0x127   :  { %940 = vst.msk [vmem:[#allocation2] sm:$0xff] %vm19_vm8, %v923_v42  ;;  %v924_v45 = vadd.f32 %v864_v43, %v362_v41  ;;  %v1514_v46 = vpop.f32.mrb[4].mxu1  ;;  %v1451_v47 = vpop.f32.mrb[5].mxu0 }
 0x128   :  { %v1452_v48 = vadd.f32 %v1451_v47, %v1450_v44  ;;  %v1515_v49 = vpop.f32.mrb[5].mxu1  ;;  %v1453_v52 = vpop.f32.mrb[6].mxu0 }
 0x129   :  { %941 = vst.msk [vmem:[#allocation2 + $0x8] sm:$0xff] %vm19_vm8, %v924_v45  ;;  %v1516_v53 = vadd.f32 %v1515_v49, %v1514_v46  ;;  %v1517_v55 = vpop.f32.mrb[6].mxu1  ;;  %v1454_v58 = vpop.f32.mrb[7].mxu0 }
 0x12a   :  { %v1455_v60 = vadd.f32 %v1454_v58, %v1453_v52  ;;  %v1518_v62 = vpop.f32.mrb[7].mxu1 }
 0x12b   :  { %v869_v27 = vadd.f32 %v1516_v53, %v1452_v48  ;;  %v1519_v0 = vadd.f32 %v1518_v62, %v1517_v55 }
 0x12d   :  { %v925_v13 = vadd.f32 %v869_v27, %v363_v59  ;;  %v872_v14 = vadd.f32 %v1519_v0, %v1455_v60  ;;  %v1139_v1 = vpop.permute.xlu0 %1138  ;;  %v369_v59 = vld [vmem:[#allocation2 + $0x40] sm:$0xff] }
 0x12e   :  { %v1456_v2 = vpop.f32.mrb[8].mxu0  ;;  %1561 = vrcp.f32 %v1139_v1  ;;  %v1088_v5 = vld [vmem:[#allocation2] sm:$0xff] }
 0x12f   :  { %942 = vst.msk [vmem:[#allocation2 + $0x10] sm:$0xff] %vm19_vm8, %v925_v13  ;;  %v926_v3 = vadd.f32 %v872_v14, %v364_v4  ;;  %v1520_v6 = vpop.f32.mrb[8].mxu1  ;;  %v1457_v8 = vpop.f32.mrb[9].mxu0  ;;  %v370_v4 = vld [vmem:[#allocation2 + $0x48] sm:$0xff] }
 0x130   :  { %v1458_v9 = vadd.f32 %v1457_v8, %v1456_v2  ;;  %v1521_v10 = vpop.f32.mrb[9].mxu1  ;;  %v1459_v11 = vpop.f32.mrb[10].mxu0  ;;  %v1089_v41 = vld [vmem:[#allocation2 + $0x8] sm:$0xff] }
 0x131   :  { %943 = vst.msk [vmem:[#allocation2 + $0x18] sm:$0xff] %vm19_vm8, %v926_v3  ;;  %v1522_v15 = vadd.f32 %v1521_v10, %v1520_v6  ;;  %v1523_v16 = vpop.f32.mrb[10].mxu1  ;;  %v1460_v17 = vpop.f32.mrb[11].mxu0 }
 0x132   :  { %v1461_v20 = vadd.f32 %v1460_v17, %v1459_v11  ;;  %v1524_v25 = vpop.f32.mrb[11].mxu1 }
 0x133   :  { %v877_v31 = vadd.f32 %v1522_v15, %v1458_v9  ;;  %v1525_v63 = vadd.f32 %v1524_v25, %v1523_v16  ;;  %v1144_v32 = vpop.permute.xlu1 %1143 }
 0x134   :  { %1563 = vrcp.f32 %v1144_v32 }
 0x135   :  { %v927_v24 = vadd.f32 %v877_v31, %v365_v18  ;;  %v880_v30 = vadd.f32 %v1525_v63, %v1461_v20 }
 0x136   :  { %v1462_v19 = vpop.f32.mrb[12].mxu0  ;;  %v1090_v14 = vld [vmem:[#allocation2 + $0x10] sm:$0xff] }
 0x137   :  { %944 = vst.msk [vmem:[#allocation2 + $0x20] sm:$0xff] %vm19_vm8, %v927_v24  ;;  %v928_v7 = vadd.f32 %v880_v30, %v366_v61  ;;  %v1526_v51 = vpop.f32.mrb[12].mxu1  ;;  %v1463_v54 = vpop.f32.mrb[13].mxu0  ;;  %v371_v61 = vld [vmem:[#allocation2 + $0x50] sm:$0xff] }
 0x138   :  { %v1562_v57 = vpop.eup %1561  ;;  %v1464_v56 = vadd.f32 %v1463_v54, %v1462_v19  ;;  %v1527_v39 = vpop.f32.mrb[13].mxu1  ;;  %v1091_v20 = vld [vmem:[#allocation2 + $0x18] sm:$0xff] }
 0x139   :  { %v1465_v50 = vpop.f32.mrb[14].mxu0  ;;  %945 = vst.msk [vmem:[#allocation2 + $0x28] sm:$0xff] %vm19_vm8, %v928_v7  ;;  %v1217_v12 = vmul.f32 %v1562_v57, %v1088_v5  ;;  %v1528_v21 = vadd.f32 %v1527_v39, %v1526_v51  ;;  %v1529_v22 = vpop.f32.mrb[14].mxu1  ;;  %v372_v54 = vld [vmem:[#allocation2 + $0x58] sm:$0xff] }
 0x13a   :  { %v1466_v23 = vpop.f32.mrb[15].mxu0  ;;  %v1530_v29 = vpop.f32.mrb[15].mxu1 }
 0x13b   :  { %v1467_v28 = vadd.f32 %v1466_v23, %v1465_v50  ;;  %v1149_v33 = vpop.permute.xlu1 %1148  ;;  %1248 = vst.msk [vmem:[%s2884_s3] sm:$0xff] %vm19_vm8, %v1217_v12  ;;  %v885_v34 = vadd.f32 %v1528_v21, %v1464_v56  ;;  %v1531_v35 = vadd.f32 %v1530_v29, %v1529_v22 }
 0x13c   :  { %1565 = vrcp.f32 %v1149_v33 }
 0x13d   :  { %v929_v37 = vadd.f32 %v885_v34, %v367_v26  ;;  %v888_v38 = vadd.f32 %v1531_v35, %v1467_v28 }
 0x13e   :  { %v1564_v40 = vpop.eup %1563  ;;  %v1468_v42 = vpop.f32.mrb[16].mxu0 }
 0x13f   :  { %v1154_v43 = vpop.permute.xlu1 %1153  ;;  %946 = vst.msk [vmem:[#allocation2 + $0x30] sm:$0xff] %vm19_vm8, %v929_v37  ;;  %v1219_v44 = vmul.f32 %v1564_v40, %v1089_v41  ;;  %v930_v45 = vadd.f32 %v888_v38, %v368_v36  ;;  %v1532_v46 = vpop.f32.mrb[16].mxu1  ;;  %v373_v37 = vld [vmem:[#allocation2 + $0x60] sm:$0xff] }
 0x140   :  { %v1469_v47 = vpop.f32.mrb[17].mxu0  ;;  %1567 = vrcp.f32 %v1154_v43  ;;  %v1533_v49 = vpop.f32.mrb[17].mxu1 }
 0x141   :  { %v1470_v48 = vadd.f32 %v1469_v47, %v1468_v42  ;;  %v1471_v52 = vpop.f32.mrb[18].mxu0  ;;  %1249 = vst.msk [vmem:[%s2884_s3 + $0x8] sm:$0xff] %vm19_vm8, %v1219_v44  ;;  %947 = vst.msk [vmem:[#allocation2 + $0x38] sm:$0xff] %vm19_vm8, %v930_v45  ;;  %v1534_v53 = vadd.f32 %v1533_v49, %v1532_v46  ;;  %v1535_v55 = vpop.f32.mrb[18].mxu1  ;;  %v1092_v45 = vld [vmem:[#allocation2 + $0x20] sm:$0xff]  ;;  %v374_v46 = vld [vmem:[#allocation2 + $0x68] sm:$0xff] }
 0x142   :  { %v1472_v58 = vpop.f32.mrb[19].mxu0  ;;  %v1536_v62 = vpop.f32.mrb[19].mxu1 }
 0x143   :  { %v1473_v60 = vadd.f32 %v1472_v58, %v1471_v52  ;;  %v893_v27 = vadd.f32 %v1534_v53, %v1470_v48  ;;  %v1537_v0 = vadd.f32 %v1536_v62, %v1535_v55  ;;  %v1093_v62 = vld [vmem:[#allocation2 + $0x28] sm:$0xff] }
 0x145   :  { %v931_v1 = vadd.f32 %v893_v27, %v369_v59  ;;  %v896_v2 = vadd.f32 %v1537_v0, %v1473_v60  ;;  %v1184_v3 = vpop.permute.xlu0 %1183 }
 0x146   :  { %v1566_v13 = vpop.eup %1565  ;;  %v1474_v8 = vpop.f32.mrb[20].mxu0  ;;  %1569 = vrcp.f32 %v1184_v3 }
 0x147   :  { %v1221_v6 = vmul.f32 %v1566_v13, %v1090_v14  ;;  %948 = vst.msk [vmem:[#allocation2 + $0x40] sm:$0xff] %vm19_vm8, %v931_v1  ;;  %v932_v9 = vadd.f32 %v896_v2, %v370_v4  ;;  %v1538_v10 = vpop.f32.mrb[20].mxu1  ;;  %v1475_v11 = vpop.f32.mrb[21].mxu0 }
 0x148   :  { %v1476_v15 = vadd.f32 %v1475_v11, %v1474_v8  ;;  %v1539_v16 = vpop.f32.mrb[21].mxu1  ;;  %v1477_v17 = vpop.f32.mrb[22].mxu0 }
 0x149   :  { %1250 = vst.msk [vmem:[%s2884_s3 + $0x10] sm:$0xff] %vm19_vm8, %v1221_v6  ;;  %949 = vst.msk [vmem:[#allocation2 + $0x48] sm:$0xff] %vm19_vm8, %v932_v9  ;;  %v1540_v25 = vadd.f32 %v1539_v16, %v1538_v10  ;;  %v1541_v31 = vpop.f32.mrb[22].mxu1  ;;  %v1159_v63 = vpop.permute.xlu1 %1158  ;;  %v375_v6 = vld [vmem:[#allocation2 + $0x70] sm:$0xff] }
 0x14a   :  { %v1568_v18 = vpop.eup %1567  ;;  %1571 = vrcp.f32 %v1159_v63  ;;  %v1478_v24 = vpop.f32.mrb[23].mxu0 }
 0x14b   :  { %v1223_v32 = vmul.f32 %v1568_v18, %v1091_v20  ;;  %v1542_v30 = vpop.f32.mrb[23].mxu1  ;;  %v901_v19 = vadd.f32 %v1540_v25, %v1476_v15  ;;  %v1479_v7 = vadd.f32 %v1478_v24, %v1477_v17  ;;  %v376_v17 = vld [vmem:[#allocation2 + $0x78] sm:$0xff] }
 0x14c   :  { %v1543_v51 = vadd.f32 %v1542_v30, %v1541_v31 }
 0x14d   :  { %1251 = vst.msk [vmem:[%s2884_s3 + $0x18] sm:$0xff] %vm19_vm8, %v1223_v32  ;;  %v933_v57 = vadd.f32 %v901_v19, %v371_v61  ;;  %v1164_v56 = vpop.permute.xlu1 %1163 }
 0x14e   :  { %v904_v5 = vadd.f32 %v1543_v51, %v1479_v7  ;;  %v1480_v39 = vpop.f32.mrb[24].mxu0  ;;  %1573 = vrcp.f32 %v1164_v56  ;;  %v1094_v51 = vld [vmem:[#allocation2 + $0x30] sm:$0xff]  ;;  %v1095_v56 = vld [vmem:[#allocation2 + $0x38] sm:$0xff] }
 0x14f   :  { %950 = vst.msk [vmem:[#allocation2 + $0x50] sm:$0xff] %vm19_vm8, %v933_v57  ;;  %v1544_v12 = vpop.f32.mrb[24].mxu1  ;;  %v1481_v21 = vpop.f32.mrb[25].mxu0 }
 0x150   :  { %v934_v50 = vadd.f32 %v904_v5, %v372_v54  ;;  %v1570_v22 = vpop.eup %1569  ;;  %v1097_v23 = vld [vmem:[#allocation2 + $0x48] sm:$0xff]  ;;  %v1482_v26 = vadd.f32 %v1481_v21, %v1480_v39  ;;  %v1545_v28 = vpop.f32.mrb[25].mxu1 }
 0x151   :  { %v1483_v29 = vpop.f32.mrb[26].mxu0  ;;  %v1235_v33 = vmul.f32 %v1570_v22, %v1097_v23  ;;  %v1546_v34 = vadd.f32 %v1545_v28, %v1544_v12  ;;  %v1547_v35 = vpop.f32.mrb[26].mxu1 }
 0x152   :  { %951 = vst.msk [vmem:[#allocation2 + $0x58] sm:$0xff] %vm19_vm8, %v934_v50  ;;  %v1194_v36 = vpop.permute.xlu0 %1193  ;;  %v1484_v38 = vpop.f32.mrb[27].mxu0 }
 0x153   :  { %1575 = vrcp.f32 %v1194_v36  ;;  %v1548_v40 = vpop.f32.mrb[27].mxu1  ;;  %1257 = vst.msk [vmem:[%s2884_s3 + $0x48] sm:$0xff] %vm19_vm8, %v1235_v33  ;;  %v909_v41 = vadd.f32 %v1546_v34, %v1482_v26  ;;  %v1485_v42 = vadd.f32 %v1484_v38, %v1483_v29  ;;  %v1096_v26 = vld [vmem:[#allocation2 + $0x40] sm:$0xff] }
 0x154   :  { %v1549_v43 = vadd.f32 %v1548_v40, %v1547_v35  ;;  %v1572_v44 = vpop.eup %1571 }
 0x155   :  { %v1225_v47 = vmul.f32 %v1572_v44, %v1092_v45  ;;  %v935_v48 = vadd.f32 %v909_v41, %v373_v37 }
 0x156   :  { %v912_v49 = vadd.f32 %v1549_v43, %v1485_v42  ;;  %v1204_v52 = vpop.permute.xlu0 %1203  ;;  %v1486_v53 = vpop.f32.mrb[28].mxu0  ;;  %v1098_v34 = vld [vmem:[#allocation2 + $0x50] sm:$0xff] }
 0x157   :  { %1577 = vrcp.f32 %v1204_v52  ;;  %1252 = vst.msk [vmem:[%s2884_s3 + $0x20] sm:$0xff] %vm19_vm8, %v1225_v47  ;;  %952 = vst.msk [vmem:[#allocation2 + $0x60] sm:$0xff] %vm19_vm8, %v935_v48  ;;  %v1550_v58 = vpop.f32.mrb[28].mxu1  ;;  %v1487_v59 = vpop.f32.mrb[29].mxu0 }
 0x158   :  { %v936_v55 = vadd.f32 %v912_v49, %v374_v46  ;;  %v1574_v60 = vpop.eup %1573  ;;  %v1488_v27 = vadd.f32 %v1487_v59, %v1486_v53  ;;  %v1551_v0 = vpop.f32.mrb[29].mxu1 }
 0x159   :  { %v1489_v4 = vpop.f32.mrb[30].mxu0  ;;  %v1227_v13 = vmul.f32 %v1574_v60, %v1093_v62  ;;  %v1552_v14 = vadd.f32 %v1551_v0, %v1550_v58  ;;  %v1553_v1 = vpop.f32.mrb[30].mxu1  ;;  %v1099_v3 = vld [vmem:[#allocation2 + $0x58] sm:$0xff] }
 0x15a   :  { %953 = vst.msk [vmem:[#allocation2 + $0x68] sm:$0xff] %vm19_vm8, %v936_v55  ;;  %v1169_v2 = vpop.permute.xlu1 %1168  ;;  %v1490_v8 = vpop.f32.mrb[31].mxu0 }
 0x15b   :  { %1579 = vrcp.f32 %v1169_v2  ;;  %v1554_v9 = vpop.f32.mrb[31].mxu1  ;;  %1253 = vst.msk [vmem:[%s2884_s3 + $0x28] sm:$0xff] %vm19_vm8, %v1227_v13  ;;  %v917_v10 = vadd.f32 %v1552_v14, %v1488_v27  ;;  %v1491_v11 = vadd.f32 %v1490_v8, %v1489_v4 }
 0x15c   :  { %v1555_v15 = vadd.f32 %v1554_v9, %v1553_v1 }
 0x15d   :  { %v1576_v16 = vpop.eup %1575  ;;  %v937_v20 = vadd.f32 %v917_v10, %v375_v6 }
 0x15e   :  { %v1239_v18 = vmul.f32 %v1576_v16, %v1099_v3  ;;  %v920_v25 = vadd.f32 %v1555_v15, %v1491_v11  ;;  %v1174_v31 = vpop.permute.xlu1 %1173  ;;  %v1214_v63 = vpop.permute.xlu0 %1213  ;;  %v1100_v37 = vld [vmem:[#allocation2 + $0x60] sm:$0xff] }
 0x15f   :  { %1581 = vrcp.f32 %v1174_v31  ;;  %954 = vst.msk [vmem:[#allocation2 + $0x70] sm:$0xff] %vm19_vm8, %v937_v20 }
 0x160   :  { %1259 = vst.msk [vmem:[%s2884_s3 + $0x58] sm:$0xff] %vm19_vm8, %v1239_v18  ;;  %v938_v32 = vadd.f32 %v920_v25, %v376_v17  ;;  %1583 = vrcp.f32 %v1214_v63 }
 0x161   :  { %v1578_v61 = vpop.eup %1577  ;;  %v1101_v24 = vld [vmem:[#allocation2 + $0x68] sm:$0xff] }
 0x162   :  { %v1243_v30 = vmul.f32 %v1578_v61, %v1101_v24  ;;  %955 = vst.msk [vmem:[#allocation2 + $0x78] sm:$0xff] %vm19_vm8, %v938_v32 }
 0x163   :  { %v1179_v19 = vpop.permute.xlu1 %1178 }
 0x164   :  { %1261 = vst.msk [vmem:[%s2884_s3 + $0x68] sm:$0xff] %vm19_vm8, %v1243_v30  ;;  %1585 = vrcp.f32 %v1179_v19 }
 0x165   :  { %v1580_v7 = vpop.eup %1579 }
 0x166   :  { %v1229_v54 = vmul.f32 %v1580_v7, %v1094_v51  ;;  %v1102_v41 = vld [vmem:[#allocation2 + $0x70] sm:$0xff] }
 0x167   :  { %v1189_v57 = vpop.permute.xlu1 %1188 }
 0x168   :  { %1254 = vst.msk [vmem:[%s2884_s3 + $0x30] sm:$0xff] %vm19_vm8, %v1229_v54  ;;  %1587 = vrcp.f32 %v1189_v57 }
 0x169   :  { %v1582_v5 = vpop.eup %1581  ;;  %v1103_v39 = vld [vmem:[#allocation2 + $0x78] sm:$0xff] }
 0x16a   :  { %v1584_v50 = vpop.eup %1583  ;;  %v1231_v12 = vmul.f32 %v1582_v5, %v1095_v56 }
 0x16b   :  { %v1247_v21 = vmul.f32 %v1584_v50, %v1103_v39  ;;  %v1199_v22 = vpop.permute.xlu1 %1198 }
 0x16c   :  { %1255 = vst.msk [vmem:[%s2884_s3 + $0x38] sm:$0xff] %vm19_vm8, %v1231_v12  ;;  %1589 = vrcp.f32 %v1199_v22 }
 0x16d   :  { %1263 = vst.msk [vmem:[%s2884_s3 + $0x78] sm:$0xff] %vm19_vm8, %v1247_v21 }
 0x16e   :  { %v1586_v23 = vpop.eup %1585 }
 0x16f   :  { %v1233_v28 = vmul.f32 %v1586_v23, %v1096_v26  ;;  %v1209_v29 = vpop.permute.xlu1 %1208 }
 0x170   :  { %1591 = vrcp.f32 %v1209_v29 }
 0x171   :  { %1256 = vst.msk [vmem:[%s2884_s3 + $0x40] sm:$0xff] %vm19_vm8, %v1233_v28 }
 0x172   :  { %v1588_v33 = vpop.eup %1587 }
 0x173   :  { %v1237_v35 = vmul.f32 %v1588_v33, %v1098_v34 }
 0x175   :  { %1258 = vst.msk [vmem:[%s2884_s3 + $0x50] sm:$0xff] %vm19_vm8, %v1237_v35 }
 0x176   :  { %v1590_v36 = vpop.eup %1589 }
 0x177   :  { %v1241_v38 = vmul.f32 %v1590_v36, %v1100_v37 }
 0x179   :  { %1260 = vst.msk [vmem:[%s2884_s3 + $0x60] sm:$0xff] %vm19_vm8, %v1241_v38 }
 0x17a   :  { %v1592_v40 = vpop.eup %1591 }
 0x17b   :  { %v1245_v42 = vmul.f32 %v1592_v40, %v1102_v41 }
 0x17d   :  { %1262 = vst.msk [vmem:[%s2884_s3 + $0x70] sm:$0xff] %vm19_vm8, %v1245_v42 }

</bundles_post_ra>
